<compile_context>
chip_gen: v6e
topology: v6e:2x2x1
jax: 0.10.0
libtpu: 0.0.40
codegen_flags: <defaults>
</compile_context>

<pallas_src>
import functools

import jax
import jax.numpy as jnp
from jax import lax
from jax.experimental import pallas as pl
from jax.experimental.pallas import tpu as pltpu


def _round_up(v, m):
    return ((v + m - 1) // m) * m


def _choose_tile_t(T, max_tile=16):
    """Largest divisor of T that is <= max_tile (time steps per grid chunk)."""
    best = 1
    for d in range(1, min(T, max_tile) + 1):
        if T % d == 0:
            best = d
    return best


# --------------------------------------------------------------------------- kernel


def _lstm_layer_kernel(x_ref, wih_ref, whh_ref, b_ref, *refs,
                       hidden_pad, batch_pad, tile_t, output_seq):
    """One LSTM layer. Grid axis 0 = time chunks (sequential recurrence).

    x_ref   : (tile_t*B_pad, I_pad)  input rows of this chunk (row = t*B_pad + b)
    wih_ref : (I_pad, 4*H_pad)       W_ih^T, gate-banded [i|f|g|o], VMEM resident
    whh_ref : (H_pad, 4*H_pad)       W_hh^T, gate-banded, VMEM resident
    b_ref   : (1, 4*H_pad)           b_ih + b_hh, gate-banded, f32
    outputs : [hseq (tile_t*B_pad, H_pad) if output_seq], h_n (B_pad, H_pad),
              c_n (B_pad, H_pad)  -- h_n/c_n written only at the last chunk.
    scratch : h_sc, c_sc (B_pad, H_pad) f32 recurrent state; pre_sc pre-gate buffer.
    """
    if output_seq:
        hseq_ref, hn_ref, cn_ref, h_sc, c_sc, pre_sc = refs
    else:
        hn_ref, cn_ref, h_sc, c_sc, pre_sc = refs
        hseq_ref = None

    t = pl.program_id(0)

    @pl.when(t == 0)
    def _init():
        h_sc[...] = jnp.zeros_like(h_sc)
        c_sc[...] = jnp.zeros_like(c_sc)

    H = hidden_pad
    B = batch_pad

    # Hoisted input projection: ONE (tile_t*B, I) x (I, 4H) MXU matmul per chunk
    # (instead of one tiny matmul per time step).
    pre_sc[...] = (
        jnp.dot(x_ref[...], wih_ref[...], preferred_element_type=jnp.float32)
        + b_ref[...])

    w_dtype = whh_ref.dtype
    h = h_sc[...]
    c = c_sc[...]

    # Unrolled serial recurrence over the chunk: only h @ W_hh per step.
    for s in range(tile_t):
        gates = pre_sc[s * B:(s + 1) * B, :] + jnp.dot(
            h.astype(w_dtype), whh_ref[...], preferred_element_type=jnp.float32)
        # Gate bands are 128-lane aligned (each band is H_pad wide): no relayouts.
        i_g = jax.nn.sigmoid(gates[:, 0 * H:1 * H])
        f_g = jax.nn.sigmoid(gates[:, 1 * H:2 * H])
        g_g = jnp.tanh(gates[:, 2 * H:3 * H])
        o_g = jax.nn.sigmoid(gates[:, 3 * H:4 * H])
        c = f_g * c + i_g * g_g
        h = o_g * jnp.tanh(c)
        if output_seq:
            # Lane-dense store: H_pad is a multiple of 128, rows are sublane aligned.
            hseq_ref[s * B:(s + 1) * B, :] = h.astype(hseq_ref.dtype)

    h_sc[...] = h
    c_sc[...] = c

    @pl.when(t == pl.num_programs(0) - 1)
    def _finalize():
        hn_ref[...] = h.astype(hn_ref.dtype)
        cn_ref[...] = c.astype(cn_ref.dtype)


def _run_lstm_layer(x2d, w_ih_p, w_hh_p, b_p, *, seq_len, batch_pad, hidden_pad,
                    tile_t, output_seq):
    """x2d: (T*B_pad, I_pad). Returns ([hseq2d], h_n, c_n)."""
    TB = tile_t * batch_pad
    n_chunks = seq_len // tile_t
    in_pad = x2d.shape[1]
    gdim = 4 * hidden_pad

    kernel = functools.partial(
        _lstm_layer_kernel, hidden_pad=hidden_pad, batch_pad=batch_pad,
        tile_t=tile_t, output_seq=output_seq)

    out_shape = []
    out_specs = []
    if output_seq:
        out_shape.append(
            jax.ShapeDtypeStruct((seq_len * batch_pad, hidden_pad), x2d.dtype))
        out_specs.append(pl.BlockSpec((TB, hidden_pad), lambda t: (t, 0)))
    out_shape += [jax.ShapeDtypeStruct((batch_pad, hidden_pad), jnp.float32),
                  jax.ShapeDtypeStruct((batch_pad, hidden_pad), jnp.float32)]
    out_specs += [pl.BlockSpec((batch_pad, hidden_pad), lambda t: (0, 0)),
                  pl.BlockSpec((batch_pad, hidden_pad), lambda t: (0, 0))]

    return pl.pallas_call(
        kernel,
        out_shape=tuple(out_shape),
        grid_spec=pltpu.PrefetchScalarGridSpec(
            num_scalar_prefetch=0,
            grid=(n_chunks,),
            in_specs=[
                # streamed time chunk (pipelined / double-buffered by Pallas)
                pl.BlockSpec((TB, in_pad), lambda t: (t, 0)),
                # weights & bias: resident in VMEM once -> no per-step DMA, no
                # weight double-buffering.
                pl.BlockSpec(memory_space=pltpu.MemorySpace.VMEM),
                pl.BlockSpec(memory_space=pltpu.MemorySpace.VMEM),
                pl.BlockSpec(memory_space=pltpu.MemorySpace.VMEM),
            ],
            out_specs=out_specs,
            scratch_shapes=[
                pltpu.VMEM((batch_pad, hidden_pad), jnp.float32),   # h state
                pltpu.VMEM((batch_pad, hidden_pad), jnp.float32),   # c state
                pltpu.VMEM((TB, gdim), jnp.float32),                # pre-gate buffer
            ],
        ),
        compiler_params=pltpu.CompilerParams(
            dimension_semantics=("arbitrary",),       # time is a serial recurrence
            vmem_limit_bytes=48 * 1024 * 1024,
        ),
    )(x2d, w_ih_p, w_hh_p, b_p)


# --------------------------------------------------------------------------- wrapper


@functools.partial(jax.jit, static_argnames=("hidden_size",))
def lstm_encoder_forward(x, packed_params, *, hidden_size):
    """x: (B, T, input_size) batch_first. packed_params from pack_lstm_params.

    Returns (h_n, c_n), each (num_layers, B, hidden_size) -- exactly the tuple the
    PyTorch module returns (its `cell`/`hidden` names are swapped, values are (h_n, c_n)).
    """
    B, T, _ = x.shape
    num_layers = len(packed_params)
    H_pad = packed_params[0][1].shape[0]
    I_pad = packed_params[0][0].shape[0]
    compute_dtype = packed_params[0][0].dtype

    B_pad = _round_up(B, 8)
    tile_t = _choose_tile_t(T)

    # Time-major, pad batch -> multiple of 8 and features -> multiple of 128,
    # flatten to 2-D once. All later layers stay in this layout (no transposes).
    x_tm = jnp.transpose(x, (1, 0, 2)).astype(jnp.float32)            # (T, B, I)
    x_tm = jnp.pad(x_tm, ((0, 0), (0, B_pad - B), (0, I_pad - x.shape[2])))
    layer_in = x_tm.reshape(T * B_pad, I_pad).astype(compute_dtype)

    h_list, c_list = [], []
    for l, (w_ih_p, w_hh_p, b_p) in enumerate(packed_params):
        output_seq = l < num_layers - 1     # top layer: skip unused hseq writeback
        outs = _run_lstm_layer(
            layer_in, w_ih_p, w_hh_p, b_p,
            seq_len=T, batch_pad=B_pad, hidden_pad=H_pad,
            tile_t=tile_t, output_seq=output_seq)
        if output_seq:
            hseq, h_n, c_n = outs
            layer_in = hseq                 # fed directly to the next layer
        else:
            h_n, c_n = outs
        h_list.append(h_n[:B, :hidden_size])
        c_list.append(c_n[:B, :hidden_size])
    return jnp.stack(h_list), jnp.stack(c_list)


# --------------------------------------------------------------------------- params


def init_lstm_params(key, input_size, hidden_size, num_layers):
    """Raw PyTorch-layout LSTM params, init U(-1/sqrt(H), 1/sqrt(H))."""
    params = []
    bound = 1.0 / float(hidden_size) ** 0.5
    in_sz = input_size
    for _ in range(num_layers):
        key, k1, k2, k3, k4 = jax.random.split(key, 5)
        w_ih = jax.random.uniform(k1, (4 * hidden_size, in_sz), jnp.float32, -bound, bound)
        w_hh = jax.random.uniform(k2, (4 * hidden_size, hidden_size), jnp.float32, -bound, bound)
        b_ih = jax.random.uniform(k3, (4 * hidden_size,), jnp.float32, -bound, bound)
        b_hh = jax.random.uniform(k4, (4 * hidden_size,), jnp.float32, -bound, bound)
        params.append((w_ih, w_hh, b_ih, b_hh))
        in_sz = hidden_size
    return params


def pack_lstm_params(raw_params, input_size, hidden_size, compute_dtype=jnp.float32):
    """Pad H to a multiple of 128, lay the gates out in lane-aligned bands [i|f|g|o],
    transpose weights for (x @ W) matmuls and fuse the two biases (bias stays f32)."""
    H = hidden_size
    H_pad = _round_up(H, 128)
    packed = []
    in_dim = input_size
    in_pad = _round_up(input_size, 128)
    for (w_ih, w_hh, b_ih, b_hh) in raw_params:
        w_ih_p = jnp.zeros((in_pad, 4 * H_pad), jnp.float32)
        w_hh_p = jnp.zeros((H_pad, 4 * H_pad), jnp.float32)
        b_p = jnp.zeros((1, 4 * H_pad), jnp.float32)
        b = b_ih + b_hh
        for g in range(4):
            col = g * H_pad
            w_ih_p = w_ih_p.at[:in_dim, col:col + H].set(w_ih[g * H:(g + 1) * H, :].T)
            w_hh_p = w_hh_p.at[:H, col:col + H].set(w_hh[g * H:(g + 1) * H, :].T)
            b_p = b_p.at[0, col:col + H].set(b[g * H:(g + 1) * H])
        packed.append((w_ih_p.astype(compute_dtype),
                       w_hh_p.astype(compute_dtype),
                       b_p))
        in_dim = H
        in_pad = H_pad
    return packed


# --------------------------------------------------------------------------- reference


def lstm_reference(x, raw_params):
    """Pure-JAX (lax.scan) reference of nn.LSTM(batch_first=True), zero init state."""
    layer_in = x
    h_out, c_out = [], []
    for (w_ih, w_hh, b_ih, b_hh) in raw_params:
        B = layer_in.shape[0]
        H = w_hh.shape[1]
        h0 = jnp.zeros((B, H), jnp.float32)
        c0 = jnp.zeros((B, H), jnp.float32)

        def step(carry, x_t, w_ih=w_ih, w_hh=w_hh, b_ih=b_ih, b_hh=b_hh, H=H):
            h, c = carry
            gates = x_t @ w_ih.T + b_ih + h @ w_hh.T + b_hh
            i = jax.nn.sigmoid(gates[:, 0 * H:1 * H])
            f = jax.nn.sigmoid(gates[:, 1 * H:2 * H])
            g = jnp.tanh(gates[:, 2 * H:3 * H])
            o = jax.nn.sigmoid(gates[:, 3 * H:4 * H])
            c_new = f * c + i * g
            h_new = o * jnp.tanh(c_new)
            return (h_new, c_new), h_new

        (h_n, c_n), hseq = lax.scan(step, (h0, c0), jnp.transpose(layer_in, (1, 0, 2)))
        h_out.append(h_n)
        c_out.append(c_n)
        layer_in = jnp.transpose(hseq, (1, 0, 2))
    return jnp.stack(h_out), jnp.stack(c_out)


# --------------------------------------------------------------------------- main


if __name__ == "__main__":
    B, T, INPUT_SIZE, HIDDEN_SIZE = 2, 8, 16, 32

    key = jax.random.PRNGKey(0)
    key, kx = jax.random.split(key)
    x = jax.random.normal(kx, (B, T, INPUT_SIZE), jnp.float32)

    for num_layers in (1, 2):
        raw = init_lstm_params(jax.random.PRNGKey(1), INPUT_SIZE, HIDDEN_SIZE, num_layers)
        h_ref, c_ref = lstm_reference(x, raw)

        # f32 MXU path (exact check against the pure-JAX reference).
        packed_f32 = pack_lstm_params(raw, INPUT_SIZE, HIDDEN_SIZE, jnp.float32)
        h_n, c_n = lstm_encoder_forward(x, packed_f32, hidden_size=HIDDEN_SIZE)
        h_n = jax.block_until_ready(h_n)
        c_n = jax.block_until_ready(c_n)
        assert h_n.shape == (num_layers, B, HIDDEN_SIZE)
        assert c_n.shape == (num_layers, B, HIDDEN_SIZE)
        assert jnp.allclose(h_n, h_ref, atol=1e-4, rtol=1e-4)
        assert jnp.allclose(c_n, c_ref, atol=1e-4, rtol=1e-4)

        # bf16 MXU path (gate math stays f32) -- loose tolerance vs the f32 reference.
        packed_bf16 = pack_lstm_params(raw, INPUT_SIZE, HIDDEN_SIZE, jnp.bfloat16)
        h_b, c_b = lstm_encoder_forward(x, packed_bf16, hidden_size=HIDDEN_SIZE)
        h_b = jax.block_until_ready(h_b)
        c_b = jax.block_until_ready(c_b)
        assert jnp.allclose(h_b.astype(jnp.float32), h_ref, atol=1e-1, rtol=1e-1)
        assert jnp.allclose(c_b.astype(jnp.float32), c_ref, atol=1e-1, rtol=1e-1)

    print("KERNEL_OK")
</pallas_src>

<mosaic_0001>
module attributes {stable_mosaic.version = 11 : i64} {
  func.func @_lstm_layer_kernel(%arg0: i32, %arg1: memref<64x128xf32, #tpu.memory_space<vmem>>, %arg2: memref<128x512xf32, #tpu.memory_space<vmem>>, %arg3: memref<128x512xf32, #tpu.memory_space<vmem>>, %arg4: memref<1x512xf32, #tpu.memory_space<vmem>>, %arg5: memref<8x128xf32, #tpu.memory_space<vmem>>, %arg6: memref<8x128xf32, #tpu.memory_space<vmem>>, %arg7: memref<8x128xf32, #tpu.memory_space<vmem>>, %arg8: memref<8x128xf32, #tpu.memory_space<vmem>>, %arg9: memref<64x512xf32, #tpu.memory_space<vmem>>) attributes {dimension_semantics = [#tpu.dimension_semantics<arbitrary>], iteration_bounds = array<i64: 1>, scalar_prefetch = 0 : i64, scratch_operands = 3 : i64, tpu.core_type = #tpu.core_type<tc>, window_params = [{transform_indices = @transform_0, window_bounds = array<i64: 64, 128>}, {pipeline_mode = #tpu.pipeline_mode<synchronous>, transform_indices = @transform_1, window_bounds = array<i64: 128, 512>}, {pipeline_mode = #tpu.pipeline_mode<synchronous>, transform_indices = @transform_2, window_bounds = array<i64: 128, 512>}, {pipeline_mode = #tpu.pipeline_mode<synchronous>, transform_indices = @transform_3, window_bounds = array<i64: 1, 512>}, {pipeline_mode = #tpu.pipeline_mode<synchronous>, transform_indices = @transform_4, window_bounds = array<i64: 8, 128>}, {pipeline_mode = #tpu.pipeline_mode<synchronous>, transform_indices = @transform_5, window_bounds = array<i64: 8, 128>}]} {
    %c0_i32 = arith.constant 0 : i32
    %0 = arith.cmpi eq, %arg0, %c0_i32 : i32
    %1 = arith.extui %0 : i1 to i32
    %c0_i32_0 = arith.constant 0 : i32
    %2 = arith.cmpi ne, %1, %c0_i32_0 : i32
    scf.if %2 {
      %cst_75 = arith.constant 0.000000e+00 : f32
      %249 = vector.broadcast %cst_75 : f32 to vector<8x128xf32>
      %c0_76 = arith.constant 0 : index
      %c0_77 = arith.constant 0 : index
      %250 = vector.load %arg7[%c0_76, %c0_77] : memref<8x128xf32, #tpu.memory_space<vmem>>, vector<8x128xf32>
      tpu.vector_store %arg7[%c0_76, %c0_77], %249 {strides = array<i32>} : memref<8x128xf32, #tpu.memory_space<vmem>>, vector<8x128xf32>,
      %cst_78 = arith.constant 0.000000e+00 : f32
      %251 = vector.broadcast %cst_78 : f32 to vector<8x128xf32>
      %c0_79 = arith.constant 0 : index
      %c0_80 = arith.constant 0 : index
      %252 = vector.load %arg8[%c0_79, %c0_80] : memref<8x128xf32, #tpu.memory_space<vmem>>, vector<8x128xf32>
      tpu.vector_store %arg8[%c0_79, %c0_80], %251 {strides = array<i32>} : memref<8x128xf32, #tpu.memory_space<vmem>>, vector<8x128xf32>,
    } else {
    }
    %c0 = arith.constant 0 : index
    %c0_1 = arith.constant 0 : index
    %3 = vector.load %arg1[%c0, %c0_1] : memref<64x128xf32, #tpu.memory_space<vmem>>, vector<64x128xf32>
    %c0_2 = arith.constant 0 : index
    %c0_3 = arith.constant 0 : index
    %4 = vector.load %arg2[%c0_2, %c0_3] : memref<128x512xf32, #tpu.memory_space<vmem>>, vector<128x512xf32>
    %cst = arith.constant dense<0.000000e+00> : vector<64x512xf32>
    %5 = tpu.matmul %3, %4, %cst {dimension_numbers = #tpu.dot_dimension_numbers<[1], [0], [0], [1], [0, 0, 1, 1], [], []>} : vector<64x128xf32>, vector<128x512xf32>, vector<64x512xf32> -> vector<64x512xf32>
    %c0_4 = arith.constant 0 : index
    %c0_5 = arith.constant 0 : index
    %6 = vector.load %arg4[%c0_4, %c0_5] : memref<1x512xf32, #tpu.memory_space<vmem>>, vector<1x512xf32>
    %7 = vector.broadcast %6 : vector<1x512xf32> to vector<64x512xf32>
    %8 = arith.addf %5, %7 : vector<64x512xf32>
    %c0_6 = arith.constant 0 : index
    %c0_7 = arith.constant 0 : index
    %9 = vector.load %arg9[%c0_6, %c0_7] : memref<64x512xf32, #tpu.memory_space<vmem>>, vector<64x512xf32>
    tpu.vector_store %arg9[%c0_6, %c0_7], %8 {strides = array<i32>} : memref<64x512xf32, #tpu.memory_space<vmem>>, vector<64x512xf32>,
    %c0_8 = arith.constant 0 : index
    %c0_9 = arith.constant 0 : index
    %10 = vector.load %arg7[%c0_8, %c0_9] : memref<8x128xf32, #tpu.memory_space<vmem>>, vector<8x128xf32>
    %c0_10 = arith.constant 0 : index
    %c0_11 = arith.constant 0 : index
    %11 = vector.load %arg8[%c0_10, %c0_11] : memref<8x128xf32, #tpu.memory_space<vmem>>, vector<8x128xf32>
    %c0_12 = arith.constant 0 : index
    %c0_13 = arith.constant 0 : index
    %12 = vector.load %arg9[%c0_12, %c0_13] : memref<64x512xf32, #tpu.memory_space<vmem>>, vector<8x512xf32>
    %c0_14 = arith.constant 0 : index
    %c0_15 = arith.constant 0 : index
    %13 = vector.load %arg3[%c0_14, %c0_15] : memref<128x512xf32, #tpu.memory_space<vmem>>, vector<128x512xf32>
    %cst_16 = arith.constant dense<0.000000e+00> : vector<8x512xf32>
    %14 = tpu.matmul %10, %13, %cst_16 {dimension_numbers = #tpu.dot_dimension_numbers<[1], [0], [0], [1], [0, 0, 1, 1], [], []>} : vector<8x128xf32>, vector<128x512xf32>, vector<8x512xf32> -> vector<8x512xf32>
    %15 = arith.addf %12, %14 : vector<8x512xf32>
    %16 = vector.extract_strided_slice %15 {offsets = [0, 0], sizes = [8, 128], strides = [1, 1]} : vector<8x512xf32> to vector<8x128xf32>
    %17 = arith.negf %16 : vector<8x128xf32>
    %18 = math.exp %17 : vector<8x128xf32>
    %cst_17 = arith.constant 1.000000e+00 : f32
    %19 = vector.broadcast %cst_17 : f32 to vector<8x128xf32>
    %20 = arith.addf %19, %18 : vector<8x128xf32>
    %21 = arith.divf %19, %20 : vector<8x128xf32>
    %22 = vector.extract_strided_slice %15 {offsets = [0, 128], sizes = [8, 128], strides = [1, 1]} : vector<8x512xf32> to vector<8x128xf32>
    %23 = arith.negf %22 : vector<8x128xf32>
    %24 = math.exp %23 : vector<8x128xf32>
    %cst_18 = arith.constant 1.000000e+00 : f32
    %25 = vector.broadcast %cst_18 : f32 to vector<8x128xf32>
    %26 = arith.addf %25, %24 : vector<8x128xf32>
    %27 = arith.divf %25, %26 : vector<8x128xf32>
    %28 = vector.extract_strided_slice %15 {offsets = [0, 256], sizes = [8, 128], strides = [1, 1]} : vector<8x512xf32> to vector<8x128xf32>
    %29 = math.tanh %28 : vector<8x128xf32>
    %30 = vector.extract_strided_slice %15 {offsets = [0, 384], sizes = [8, 128], strides = [1, 1]} : vector<8x512xf32> to vector<8x128xf32>
    %31 = arith.negf %30 : vector<8x128xf32>
    %32 = math.exp %31 : vector<8x128xf32>
    %cst_19 = arith.constant 1.000000e+00 : f32
    %33 = vector.broadcast %cst_19 : f32 to vector<8x128xf32>
    %34 = arith.addf %33, %32 : vector<8x128xf32>
    %35 = arith.divf %33, %34 : vector<8x128xf32>
    %36 = arith.mulf %27, %11 : vector<8x128xf32>
    %37 = arith.mulf %21, %29 : vector<8x128xf32>
    %38 = arith.addf %36, %37 : vector<8x128xf32>
    %39 = math.tanh %38 : vector<8x128xf32>
    %40 = arith.mulf %35, %39 : vector<8x128xf32>
    %c8 = arith.constant 8 : index
    %c0_20 = arith.constant 0 : index
    %41 = vector.load %arg9[%c8, %c0_20] : memref<64x512xf32, #tpu.memory_space<vmem>>, vector<8x512xf32>
    %c0_21 = arith.constant 0 : index
    %c0_22 = arith.constant 0 : index
    %42 = vector.load %arg3[%c0_21, %c0_22] : memref<128x512xf32, #tpu.memory_space<vmem>>, vector<128x512xf32>
    %cst_23 = arith.constant dense<0.000000e+00> : vector<8x512xf32>
    %43 = tpu.matmul %40, %42, %cst_23 {dimension_numbers = #tpu.dot_dimension_numbers<[1], [0], [0], [1], [0, 0, 1, 1], [], []>} : vector<8x128xf32>, vector<128x512xf32>, vector<8x512xf32> -> vector<8x512xf32>
    %44 = arith.addf %41, %43 : vector<8x512xf32>
    %45 = vector.extract_strided_slice %44 {offsets = [0, 0], sizes = [8, 128], strides = [1, 1]} : vector<8x512xf32> to vector<8x128xf32>
    %46 = arith.negf %45 : vector<8x128xf32>
    %47 = math.exp %46 : vector<8x128xf32>
    %cst_24 = arith.constant 1.000000e+00 : f32
    %48 = vector.broadcast %cst_24 : f32 to vector<8x128xf32>
    %49 = arith.addf %48, %47 : vector<8x128xf32>
    %50 = arith.divf %48, %49 : vector<8x128xf32>
    %51 = vector.extract_strided_slice %44 {offsets = [0, 128], sizes = [8, 128], strides = [1, 1]} : vector<8x512xf32> to vector<8x128xf32>
    %52 = arith.negf %51 : vector<8x128xf32>
    %53 = math.exp %52 : vector<8x128xf32>
    %cst_25 = arith.constant 1.000000e+00 : f32
    %54 = vector.broadcast %cst_25 : f32 to vector<8x128xf32>
    %55 = arith.addf %54, %53 : vector<8x128xf32>
    %56 = arith.divf %54, %55 : vector<8x128xf32>
    %57 = vector.extract_strided_slice %44 {offsets = [0, 256], sizes = [8, 128], strides = [1, 1]} : vector<8x512xf32> to vector<8x128xf32>
    %58 = math.tanh %57 : vector<8x128xf32>
    %59 = vector.extract_strided_slice %44 {offsets = [0, 384], sizes = [8, 128], strides = [1, 1]} : vector<8x512xf32> to vector<8x128xf32>
    %60 = arith.negf %59 : vector<8x128xf32>
    %61 = math.exp %60 : vector<8x128xf32>
    %cst_26 = arith.constant 1.000000e+00 : f32
    %62 = vector.broadcast %cst_26 : f32 to vector<8x128xf32>
    %63 = arith.addf %62, %61 : vector<8x128xf32>
    %64 = arith.divf %62, %63 : vector<8x128xf32>
    %65 = arith.mulf %56, %38 : vector<8x128xf32>
    %66 = arith.mulf %50, %58 : vector<8x128xf32>
    %67 = arith.addf %65, %66 : vector<8x128xf32>
    %68 = math.tanh %67 : vector<8x128xf32>
    %69 = arith.mulf %64, %68 : vector<8x128xf32>
    %c16 = arith.constant 16 : index
    %c0_27 = arith.constant 0 : index
    %70 = vector.load %arg9[%c16, %c0_27] : memref<64x512xf32, #tpu.memory_space<vmem>>, vector<8x512xf32>
    %c0_28 = arith.constant 0 : index
    %c0_29 = arith.constant 0 : index
    %71 = vector.load %arg3[%c0_28, %c0_29] : memref<128x512xf32, #tpu.memory_space<vmem>>, vector<128x512xf32>
    %cst_30 = arith.constant dense<0.000000e+00> : vector<8x512xf32>
    %72 = tpu.matmul %69, %71, %cst_30 {dimension_numbers = #tpu.dot_dimension_numbers<[1], [0], [0], [1], [0, 0, 1, 1], [], []>} : vector<8x128xf32>, vector<128x512xf32>, vector<8x512xf32> -> vector<8x512xf32>
    %73 = arith.addf %70, %72 : vector<8x512xf32>
    %74 = vector.extract_strided_slice %73 {offsets = [0, 0], sizes = [8, 128], strides = [1, 1]} : vector<8x512xf32> to vector<8x128xf32>
    %75 = arith.negf %74 : vector<8x128xf32>
    %76 = math.exp %75 : vector<8x128xf32>
    %cst_31 = arith.constant 1.000000e+00 : f32
    %77 = vector.broadcast %cst_31 : f32 to vector<8x128xf32>
    %78 = arith.addf %77, %76 : vector<8x128xf32>
    %79 = arith.divf %77, %78 : vector<8x128xf32>
    %80 = vector.extract_strided_slice %73 {offsets = [0, 128], sizes = [8, 128], strides = [1, 1]} : vector<8x512xf32> to vector<8x128xf32>
    %81 = arith.negf %80 : vector<8x128xf32>
    %82 = math.exp %81 : vector<8x128xf32>
    %cst_32 = arith.constant 1.000000e+00 : f32
    %83 = vector.broadcast %cst_32 : f32 to vector<8x128xf32>
    %84 = arith.addf %83, %82 : vector<8x128xf32>
    %85 = arith.divf %83, %84 : vector<8x128xf32>
    %86 = vector.extract_strided_slice %73 {offsets = [0, 256], sizes = [8, 128], strides = [1, 1]} : vector<8x512xf32> to vector<8x128xf32>
    %87 = math.tanh %86 : vector<8x128xf32>
    %88 = vector.extract_strided_slice %73 {offsets = [0, 384], sizes = [8, 128], strides = [1, 1]} : vector<8x512xf32> to vector<8x128xf32>
    %89 = arith.negf %88 : vector<8x128xf32>
    %90 = math.exp %89 : vector<8x128xf32>
    %cst_33 = arith.constant 1.000000e+00 : f32
    %91 = vector.broadcast %cst_33 : f32 to vector<8x128xf32>
    %92 = arith.addf %91, %90 : vector<8x128xf32>
    %93 = arith.divf %91, %92 : vector<8x128xf32>
    %94 = arith.mulf %85, %67 : vector<8x128xf32>
    %95 = arith.mulf %79, %87 : vector<8x128xf32>
    %96 = arith.addf %94, %95 : vector<8x128xf32>
    %97 = math.tanh %96 : vector<8x128xf32>
    %98 = arith.mulf %93, %97 : vector<8x128xf32>
    %c24 = arith.constant 24 : index
    %c0_34 = arith.constant 0 : index
    %99 = vector.load %arg9[%c24, %c0_34] : memref<64x512xf32, #tpu.memory_space<vmem>>, vector<8x512xf32>
    %c0_35 = arith.constant 0 : index
    %c0_36 = arith.constant 0 : index
    %100 = vector.load %arg3[%c0_35, %c0_36] : memref<128x512xf32, #tpu.memory_space<vmem>>, vector<128x512xf32>
    %cst_37 = arith.constant dense<0.000000e+00> : vector<8x512xf32>
    %101 = tpu.matmul %98, %100, %cst_37 {dimension_numbers = #tpu.dot_dimension_numbers<[1], [0], [0], [1], [0, 0, 1, 1], [], []>} : vector<8x128xf32>, vector<128x512xf32>, vector<8x512xf32> -> vector<8x512xf32>
    %102 = arith.addf %99, %101 : vector<8x512xf32>
    %103 = vector.extract_strided_slice %102 {offsets = [0, 0], sizes = [8, 128], strides = [1, 1]} : vector<8x512xf32> to vector<8x128xf32>
    %104 = arith.negf %103 : vector<8x128xf32>
    %105 = math.exp %104 : vector<8x128xf32>
    %cst_38 = arith.constant 1.000000e+00 : f32
    %106 = vector.broadcast %cst_38 : f32 to vector<8x128xf32>
    %107 = arith.addf %106, %105 : vector<8x128xf32>
    %108 = arith.divf %106, %107 : vector<8x128xf32>
    %109 = vector.extract_strided_slice %102 {offsets = [0, 128], sizes = [8, 128], strides = [1, 1]} : vector<8x512xf32> to vector<8x128xf32>
    %110 = arith.negf %109 : vector<8x128xf32>
    %111 = math.exp %110 : vector<8x128xf32>
    %cst_39 = arith.constant 1.000000e+00 : f32
    %112 = vector.broadcast %cst_39 : f32 to vector<8x128xf32>
    %113 = arith.addf %112, %111 : vector<8x128xf32>
    %114 = arith.divf %112, %113 : vector<8x128xf32>
    %115 = vector.extract_strided_slice %102 {offsets = [0, 256], sizes = [8, 128], strides = [1, 1]} : vector<8x512xf32> to vector<8x128xf32>
    %116 = math.tanh %115 : vector<8x128xf32>
    %117 = vector.extract_strided_slice %102 {offsets = [0, 384], sizes = [8, 128], strides = [1, 1]} : vector<8x512xf32> to vector<8x128xf32>
    %118 = arith.negf %117 : vector<8x128xf32>
    %119 = math.exp %118 : vector<8x128xf32>
    %cst_40 = arith.constant 1.000000e+00 : f32
    %120 = vector.broadcast %cst_40 : f32 to vector<8x128xf32>
    %121 = arith.addf %120, %119 : vector<8x128xf32>
    %122 = arith.divf %120, %121 : vector<8x128xf32>
    %123 = arith.mulf %114, %96 : vector<8x128xf32>
    %124 = arith.mulf %108, %116 : vector<8x128xf32>
    %125 = arith.addf %123, %124 : vector<8x128xf32>
    %126 = math.tanh %125 : vector<8x128xf32>
    %127 = arith.mulf %122, %126 : vector<8x128xf32>
    %c32 = arith.constant 32 : index
    %c0_41 = arith.constant 0 : index
    %128 = vector.load %arg9[%c32, %c0_41] : memref<64x512xf32, #tpu.memory_space<vmem>>, vector<8x512xf32>
    %c0_42 = arith.constant 0 : index
    %c0_43 = arith.constant 0 : index
    %129 = vector.load %arg3[%c0_42, %c0_43] : memref<128x512xf32, #tpu.memory_space<vmem>>, vector<128x512xf32>
    %cst_44 = arith.constant dense<0.000000e+00> : vector<8x512xf32>
    %130 = tpu.matmul %127, %129, %cst_44 {dimension_numbers = #tpu.dot_dimension_numbers<[1], [0], [0], [1], [0, 0, 1, 1], [], []>} : vector<8x128xf32>, vector<128x512xf32>, vector<8x512xf32> -> vector<8x512xf32>
    %131 = arith.addf %128, %130 : vector<8x512xf32>
    %132 = vector.extract_strided_slice %131 {offsets = [0, 0], sizes = [8, 128], strides = [1, 1]} : vector<8x512xf32> to vector<8x128xf32>
    %133 = arith.negf %132 : vector<8x128xf32>
    %134 = math.exp %133 : vector<8x128xf32>
    %cst_45 = arith.constant 1.000000e+00 : f32
    %135 = vector.broadcast %cst_45 : f32 to vector<8x128xf32>
    %136 = arith.addf %135, %134 : vector<8x128xf32>
    %137 = arith.divf %135, %136 : vector<8x128xf32>
    %138 = vector.extract_strided_slice %131 {offsets = [0, 128], sizes = [8, 128], strides = [1, 1]} : vector<8x512xf32> to vector<8x128xf32>
    %139 = arith.negf %138 : vector<8x128xf32>
    %140 = math.exp %139 : vector<8x128xf32>
    %cst_46 = arith.constant 1.000000e+00 : f32
    %141 = vector.broadcast %cst_46 : f32 to vector<8x128xf32>
    %142 = arith.addf %141, %140 : vector<8x128xf32>
    %143 = arith.divf %141, %142 : vector<8x128xf32>
    %144 = vector.extract_strided_slice %131 {offsets = [0, 256], sizes = [8, 128], strides = [1, 1]} : vector<8x512xf32> to vector<8x128xf32>
    %145 = math.tanh %144 : vector<8x128xf32>
    %146 = vector.extract_strided_slice %131 {offsets = [0, 384], sizes = [8, 128], strides = [1, 1]} : vector<8x512xf32> to vector<8x128xf32>
    %147 = arith.negf %146 : vector<8x128xf32>
    %148 = math.exp %147 : vector<8x128xf32>
    %cst_47 = arith.constant 1.000000e+00 : f32
    %149 = vector.broadcast %cst_47 : f32 to vector<8x128xf32>
    %150 = arith.addf %149, %148 : vector<8x128xf32>
    %151 = arith.divf %149, %150 : vector<8x128xf32>
    %152 = arith.mulf %143, %125 : vector<8x128xf32>
    %153 = arith.mulf %137, %145 : vector<8x128xf32>
    %154 = arith.addf %152, %153 : vector<8x128xf32>
    %155 = math.tanh %154 : vector<8x128xf32>
    %156 = arith.mulf %151, %155 : vector<8x128xf32>
    %c40 = arith.constant 40 : index
    %c0_48 = arith.constant 0 : index
    %157 = vector.load %arg9[%c40, %c0_48] : memref<64x512xf32, #tpu.memory_space<vmem>>, vector<8x512xf32>
    %c0_49 = arith.constant 0 : index
    %c0_50 = arith.constant 0 : index
    %158 = vector.load %arg3[%c0_49, %c0_50] : memref<128x512xf32, #tpu.memory_space<vmem>>, vector<128x512xf32>
    %cst_51 = arith.constant dense<0.000000e+00> : vector<8x512xf32>
    %159 = tpu.matmul %156, %158, %cst_51 {dimension_numbers = #tpu.dot_dimension_numbers<[1], [0], [0], [1], [0, 0, 1, 1], [], []>} : vector<8x128xf32>, vector<128x512xf32>, vector<8x512xf32> -> vector<8x512xf32>
    %160 = arith.addf %157, %159 : vector<8x512xf32>
    %161 = vector.extract_strided_slice %160 {offsets = [0, 0], sizes = [8, 128], strides = [1, 1]} : vector<8x512xf32> to vector<8x128xf32>
    %162 = arith.negf %161 : vector<8x128xf32>
    %163 = math.exp %162 : vector<8x128xf32>
    %cst_52 = arith.constant 1.000000e+00 : f32
    %164 = vector.broadcast %cst_52 : f32 to vector<8x128xf32>
    %165 = arith.addf %164, %163 : vector<8x128xf32>
    %166 = arith.divf %164, %165 : vector<8x128xf32>
    %167 = vector.extract_strided_slice %160 {offsets = [0, 128], sizes = [8, 128], strides = [1, 1]} : vector<8x512xf32> to vector<8x128xf32>
    %168 = arith.negf %167 : vector<8x128xf32>
    %169 = math.exp %168 : vector<8x128xf32>
    %cst_53 = arith.constant 1.000000e+00 : f32
    %170 = vector.broadcast %cst_53 : f32 to vector<8x128xf32>
    %171 = arith.addf %170, %169 : vector<8x128xf32>
    %172 = arith.divf %170, %171 : vector<8x128xf32>
    %173 = vector.extract_strided_slice %160 {offsets = [0, 256], sizes = [8, 128], strides = [1, 1]} : vector<8x512xf32> to vector<8x128xf32>
    %174 = math.tanh %173 : vector<8x128xf32>
    %175 = vector.extract_strided_slice %160 {offsets = [0, 384], sizes = [8, 128], strides = [1, 1]} : vector<8x512xf32> to vector<8x128xf32>
    %176 = arith.negf %175 : vector<8x128xf32>
    %177 = math.exp %176 : vector<8x128xf32>
    %cst_54 = arith.constant 1.000000e+00 : f32
    %178 = vector.broadcast %cst_54 : f32 to vector<8x128xf32>
    %179 = arith.addf %178, %177 : vector<8x128xf32>
    %180 = arith.divf %178, %179 : vector<8x128xf32>
    %181 = arith.mulf %172, %154 : vector<8x128xf32>
    %182 = arith.mulf %166, %174 : vector<8x128xf32>
    %183 = arith.addf %181, %182 : vector<8x128xf32>
    %184 = math.tanh %183 : vector<8x128xf32>
    %185 = arith.mulf %180, %184 : vector<8x128xf32>
    %c48 = arith.constant 48 : index
    %c0_55 = arith.constant 0 : index
    %186 = vector.load %arg9[%c48, %c0_55] : memref<64x512xf32, #tpu.memory_space<vmem>>, vector<8x512xf32>
    %c0_56 = arith.constant 0 : index
    %c0_57 = arith.constant 0 : index
    %187 = vector.load %arg3[%c0_56, %c0_57] : memref<128x512xf32, #tpu.memory_space<vmem>>, vector<128x512xf32>
    %cst_58 = arith.constant dense<0.000000e+00> : vector<8x512xf32>
    %188 = tpu.matmul %185, %187, %cst_58 {dimension_numbers = #tpu.dot_dimension_numbers<[1], [0], [0], [1], [0, 0, 1, 1], [], []>} : vector<8x128xf32>, vector<128x512xf32>, vector<8x512xf32> -> vector<8x512xf32>
    %189 = arith.addf %186, %188 : vector<8x512xf32>
    %190 = vector.extract_strided_slice %189 {offsets = [0, 0], sizes = [8, 128], strides = [1, 1]} : vector<8x512xf32> to vector<8x128xf32>
    %191 = arith.negf %190 : vector<8x128xf32>
    %192 = math.exp %191 : vector<8x128xf32>
    %cst_59 = arith.constant 1.000000e+00 : f32
    %193 = vector.broadcast %cst_59 : f32 to vector<8x128xf32>
    %194 = arith.addf %193, %192 : vector<8x128xf32>
    %195 = arith.divf %193, %194 : vector<8x128xf32>
    %196 = vector.extract_strided_slice %189 {offsets = [0, 128], sizes = [8, 128], strides = [1, 1]} : vector<8x512xf32> to vector<8x128xf32>
    %197 = arith.negf %196 : vector<8x128xf32>
    %198 = math.exp %197 : vector<8x128xf32>
    %cst_60 = arith.constant 1.000000e+00 : f32
    %199 = vector.broadcast %cst_60 : f32 to vector<8x128xf32>
    %200 = arith.addf %199, %198 : vector<8x128xf32>
    %201 = arith.divf %199, %200 : vector<8x128xf32>
    %202 = vector.extract_strided_slice %189 {offsets = [0, 256], sizes = [8, 128], strides = [1, 1]} : vector<8x512xf32> to vector<8x128xf32>
    %203 = math.tanh %202 : vector<8x128xf32>
    %204 = vector.extract_strided_slice %189 {offsets = [0, 384], sizes = [8, 128], strides = [1, 1]} : vector<8x512xf32> to vector<8x128xf32>
    %205 = arith.negf %204 : vector<8x128xf32>
    %206 = math.exp %205 : vector<8x128xf32>
    %cst_61 = arith.constant 1.000000e+00 : f32
    %207 = vector.broadcast %cst_61 : f32 to vector<8x128xf32>
    %208 = arith.addf %207, %206 : vector<8x128xf32>
    %209 = arith.divf %207, %208 : vector<8x128xf32>
    %210 = arith.mulf %201, %183 : vector<8x128xf32>
    %211 = arith.mulf %195, %203 : vector<8x128xf32>
    %212 = arith.addf %210, %211 : vector<8x128xf32>
    %213 = math.tanh %212 : vector<8x128xf32>
    %214 = arith.mulf %209, %213 : vector<8x128xf32>
    %c56 = arith.constant 56 : index
    %c0_62 = arith.constant 0 : index
    %215 = vector.load %arg9[%c56, %c0_62] : memref<64x512xf32, #tpu.memory_space<vmem>>, vector<8x512xf32>
    %c0_63 = arith.constant 0 : index
    %c0_64 = arith.constant 0 : index
    %216 = vector.load %arg3[%c0_63, %c0_64] : memref<128x512xf32, #tpu.memory_space<vmem>>, vector<128x512xf32>
    %cst_65 = arith.constant dense<0.000000e+00> : vector<8x512xf32>
    %217 = tpu.matmul %214, %216, %cst_65 {dimension_numbers = #tpu.dot_dimension_numbers<[1], [0], [0], [1], [0, 0, 1, 1], [], []>} : vector<8x128xf32>, vector<128x512xf32>, vector<8x512xf32> -> vector<8x512xf32>
    %218 = arith.addf %215, %217 : vector<8x512xf32>
    %219 = vector.extract_strided_slice %218 {offsets = [0, 0], sizes = [8, 128], strides = [1, 1]} : vector<8x512xf32> to vector<8x128xf32>
    %220 = arith.negf %219 : vector<8x128xf32>
    %221 = math.exp %220 : vector<8x128xf32>
    %cst_66 = arith.constant 1.000000e+00 : f32
    %222 = vector.broadcast %cst_66 : f32 to vector<8x128xf32>
    %223 = arith.addf %222, %221 : vector<8x128xf32>
    %224 = arith.divf %222, %223 : vector<8x128xf32>
    %225 = vector.extract_strided_slice %218 {offsets = [0, 128], sizes = [8, 128], strides = [1, 1]} : vector<8x512xf32> to vector<8x128xf32>
    %226 = arith.negf %225 : vector<8x128xf32>
    %227 = math.exp %226 : vector<8x128xf32>
    %cst_67 = arith.constant 1.000000e+00 : f32
    %228 = vector.broadcast %cst_67 : f32 to vector<8x128xf32>
    %229 = arith.addf %228, %227 : vector<8x128xf32>
    %230 = arith.divf %228, %229 : vector<8x128xf32>
    %231 = vector.extract_strided_slice %218 {offsets = [0, 256], sizes = [8, 128], strides = [1, 1]} : vector<8x512xf32> to vector<8x128xf32>
    %232 = math.tanh %231 : vector<8x128xf32>
    %233 = vector.extract_strided_slice %218 {offsets = [0, 384], sizes = [8, 128], strides = [1, 1]} : vector<8x512xf32> to vector<8x128xf32>
    %234 = arith.negf %233 : vector<8x128xf32>
    %235 = math.exp %234 : vector<8x128xf32>
    %cst_68 = arith.constant 1.000000e+00 : f32
    %236 = vector.broadcast %cst_68 : f32 to vector<8x128xf32>
    %237 = arith.addf %236, %235 : vector<8x128xf32>
    %238 = arith.divf %236, %237 : vector<8x128xf32>
    %239 = arith.mulf %230, %212 : vector<8x128xf32>
    %240 = arith.mulf %224, %232 : vector<8x128xf32>
    %241 = arith.addf %239, %240 : vector<8x128xf32>
    %242 = math.tanh %241 : vector<8x128xf32>
    %243 = arith.mulf %238, %242 : vector<8x128xf32>
    %c0_69 = arith.constant 0 : index
    %c0_70 = arith.constant 0 : index
    %244 = vector.load %arg7[%c0_69, %c0_70] : memref<8x128xf32, #tpu.memory_space<vmem>>, vector<8x128xf32>
    tpu.vector_store %arg7[%c0_69, %c0_70], %243 {strides = array<i32>} : memref<8x128xf32, #tpu.memory_space<vmem>>, vector<8x128xf32>,
    %c0_71 = arith.constant 0 : index
    %c0_72 = arith.constant 0 : index
    %245 = vector.load %arg8[%c0_71, %c0_72] : memref<8x128xf32, #tpu.memory_space<vmem>>, vector<8x128xf32>
    tpu.vector_store %arg8[%c0_71, %c0_72], %241 {strides = array<i32>} : memref<8x128xf32, #tpu.memory_space<vmem>>, vector<8x128xf32>,
    %c0_i32_73 = arith.constant 0 : i32
    %246 = arith.cmpi eq, %arg0, %c0_i32_73 : i32
    %247 = arith.extui %246 : i1 to i32
    %c0_i32_74 = arith.constant 0 : i32
    %248 = arith.cmpi ne, %247, %c0_i32_74 : i32
    scf.if %248 {
      %c0_75 = arith.constant 0 : index
      %c0_76 = arith.constant 0 : index
      %249 = vector.load %arg5[%c0_75, %c0_76] : memref<8x128xf32, #tpu.memory_space<vmem>>, vector<8x128xf32>
      tpu.vector_store %arg5[%c0_75, %c0_76], %243 {strides = array<i32>} : memref<8x128xf32, #tpu.memory_space<vmem>>, vector<8x128xf32>,
      %c0_77 = arith.constant 0 : index
      %c0_78 = arith.constant 0 : index
      %250 = vector.load %arg6[%c0_77, %c0_78] : memref<8x128xf32, #tpu.memory_space<vmem>>, vector<8x128xf32>
      tpu.vector_store %arg6[%c0_77, %c0_78], %241 {strides = array<i32>} : memref<8x128xf32, #tpu.memory_space<vmem>>, vector<8x128xf32>,
    } else {
    }
    return
  }
  func.func @transform_0(%arg0: i32) -> (i32, i32) {
    %c0_i32 = arith.constant 0 : i32
    %c0_i32_0 = arith.constant 0 : i32
    return %arg0, %c0_i32 : i32, i32
  }
  func.func @transform_1(%arg0: i32) -> (i32, i32) {
    %c0_i32 = arith.constant 0 : i32
    %c0_i32_0 = arith.constant 0 : i32
    %c0_i32_1 = arith.constant 0 : i32
    return %c0_i32, %c0_i32_0 : i32, i32
  }
  func.func @transform_2(%arg0: i32) -> (i32, i32) {
    %c0_i32 = arith.constant 0 : i32
    %c0_i32_0 = arith.constant 0 : i32
    %c0_i32_1 = arith.constant 0 : i32
    return %c0_i32, %c0_i32_0 : i32, i32
  }
  func.func @transform_3(%arg0: i32) -> (i32, i32) {
    %c0_i32 = arith.constant 0 : i32
    %c0_i32_0 = arith.constant 0 : i32
    %c0_i32_1 = arith.constant 0 : i32
    return %c0_i32, %c0_i32_0 : i32, i32
  }
  func.func @transform_4(%arg0: i32) -> (i32, i32) {
    %c0_i32 = arith.constant 0 : i32
    %c0_i32_0 = arith.constant 0 : i32
    %c0_i32_1 = arith.constant 0 : i32
    return %c0_i32, %c0_i32_0 : i32, i32
  }
  func.func @transform_5(%arg0: i32) -> (i32, i32) {
    %c0_i32 = arith.constant 0 : i32
    %c0_i32_0 = arith.constant 0 : i32
    %c0_i32_1 = arith.constant 0 : i32
    return %c0_i32, %c0_i32_0 : i32, i32
  }
}

</mosaic_0001>

<bundles_post_ra>
// kernel: lstm_encoder_forward.1
= control target key start
LH: loop header
LB: loop body
LE: loop exit
PB: predicated region body
PF: predicated region fallthrough
CT: control target
= control target key end

     0   :  { %11 = vsyncpa [#allocation6], 0  ;;  %s3161_s0 = inlined_call_operand.vmem [shape: f32[64,128], index: 0, kind: input, shape index: {}]   ;;  %s3162_s1 = inlined_call_operand.hbm [shape: f32[128,512], index: 1, kind: input, shape index: {}]   ;;  %s3163_s2 = inlined_call_operand.hbm [shape: f32[128,512], index: 2, kind: input, shape index: {}]   ;;  %s3164_s3 = inlined_call_operand.vmem [shape: f32[1,512], index: 3, kind: input, shape index: {}]   ;;  %s3165_s4 = inlined_call_operand.vmem [shape: f32[8,128], index: 4, kind: output, shape index: {0}]   ;;  %s3166_s5 = inlined_call_operand.vmem [shape: f32[8,128], index: 5, kind: output, shape index: {1}]  }
   0x1   :  { %12 = vsyncpa [#allocation8], 0  ;;  %s2145_s18 = smov [#allocation5]  }
   0x2   :  { %s20_s19 = sshll.u32 %s2145_s18, 4  ;;  %s21_s19 = int_to_ptr.vmem [resolvable:$true] %s20_s19 }
   0x3   :  { %s2109_s20 = scalar_lea.vmem %s21_s19, 8192  ;;  %p2114_p1 = scmp.lt.s32.totalorder %s21_s19, %s21_s19 }
   0x4   :  { %p2110_p0 = scmp.ne.s32.totalorder %s21_s19, %s2109_s20  ;;  %p2115_p2 = scmp.lt.s32.totalorder %s2109_s20, %s2109_s20 }
   0x6   :  { %p2116_p3 = por %p2115_p2, %p2114_p1 }
   0x8   :  { %p2117_p4 = pnand %p2116_p3, %p2110_p0 }
   0xa   :  { %2120 = shalt.err (!%p2117_p4)
}
   0xb   :  { %s2146_s21 = smov 512   ;;  %s2147_s22 = smov 32  }
   0xc   :  { %26 = dma.hbm_to_vmem [thread:$0]  %s3162_s1, 8192, %s21_s19, [#allocation6], %s2146_s21, %s2146_s21, %s2147_s22  }
   0xd   :  { %s2148_s25 = smov [#allocation7]  }
   0xe   :  { %s32_s26 = sshll.u32 %s2148_s25, 4  ;;  %s33_s26 = int_to_ptr.vmem [resolvable:$true] %s32_s26 }
   0xf   :  { %s2129_s27 = scalar_lea.vmem %s33_s26, 8192  ;;  %p2134_p6 = scmp.lt.s32.totalorder %s33_s26, %s33_s26 }
  0x10   :  { %p2130_p5 = scmp.ne.s32.totalorder %s33_s26, %s2129_s27  ;;  %p2135_p7 = scmp.lt.s32.totalorder %s2129_s27, %s2129_s27 }
  0x12   :  { %p2136_p8 = por %p2135_p7, %p2134_p6 }
  0x14   :  { %p2137_p9 = pnand %p2136_p8, %p2130_p5 }
  0x16   :  { %2140 = shalt.err (!%p2137_p9)
}
  0x17   :  { %38 = dma.hbm_to_vmem [thread:$0]  %s3163_s2, 8192, %s33_s26, [#allocation8], %s2146_s21, %s2146_s21, %s2147_s22  }
  0x18   :  { %2141 = dma.done.wait [#allocation6], 8192  }
  0x19   :  { %2142 = vsyncadd [#allocation6], 4294959104 }
  0x1a   :  { %2143 = dma.done.wait [#allocation8], 8192  }
  0x1b   :  { %2144 = vsyncadd [#allocation8], 4294959104  ;;  %v3167_v0 = vmov 0.0   ;;  %v122_v1 = vld [vmem:[#allocation5 + $0x1e8] sm:$0xff]  ;;  %v124_v2 = vld [vmem:[#allocation5 + $0x1f8] sm:$0xff] }
  0x1c   :  { %211 = vmatprep.mubr.f32.mxu0 %v3167_v0  ;;  %324 = vmatprep.mubr.f32.mxu1 %v3167_v0  ;;  %v121_v3 = vld [vmem:[#allocation5 + $0x1e0] sm:$0xff]  ;;  %v123_v4 = vld [vmem:[#allocation5 + $0x1f0] sm:$0xff]  ;;  %v118_v5 = vld [vmem:[#allocation5 + $0x1c8] sm:$0xff] }
  0x1d   :  { %147 = vmatprep.subr.mxu0 %v122_v1  ;;  %260 = vmatprep.subr.mxu1 %v124_v2  ;;  %v120_v6 = vld [vmem:[#allocation5 + $0x1d8] sm:$0xff]  ;;  %v117_v7 = vld [vmem:[#allocation5 + $0x1c0] sm:$0xff]  ;;  %v119_v8 = vld [vmem:[#allocation5 + $0x1d0] sm:$0xff] }
  0x1e   :  { %148 = vmatpush1.msra.mxu0 %v121_v3  ;;  %261 = vmatpush1.msra.mxu1 %v123_v4  ;;  %v114_v9 = vld [vmem:[#allocation5 + $0x1a8] sm:$0xff]  ;;  %v116_v10 = vld [vmem:[#allocation5 + $0x1b8] sm:$0xff]  ;;  %v113_v11 = vld [vmem:[#allocation5 + $0x1a0] sm:$0xff] }
  0x1f   :  { %149 = vmatprep.subr.mxu0 %v118_v5  ;;  %262 = vmatprep.subr.mxu1 %v120_v6  ;;  %v115_v12 = vld [vmem:[#allocation5 + $0x1b0] sm:$0xff]  ;;  %v110_v13 = vld [vmem:[#allocation5 + $0x188] sm:$0xff]  ;;  %v112_v14 = vld [vmem:[#allocation5 + $0x198] sm:$0xff] }
  0x20   :  { %150 = vmatpush1.msra.mxu0 %v117_v7  ;;  %263 = vmatpush1.msra.mxu1 %v119_v8  ;;  %v109_v15 = vld [vmem:[#allocation5 + $0x180] sm:$0xff]  ;;  %v111_v16 = vld [vmem:[#allocation5 + $0x190] sm:$0xff]  ;;  %v106_v17 = vld [vmem:[#allocation5 + $0x168] sm:$0xff] }
  0x21   :  { %151 = vmatprep.subr.mxu0 %v114_v9  ;;  %264 = vmatprep.subr.mxu1 %v116_v10  ;;  %v108_v18 = vld [vmem:[#allocation5 + $0x178] sm:$0xff]  ;;  %v105_v19 = vld [vmem:[#allocation5 + $0x160] sm:$0xff]  ;;  %v107_v20 = vld [vmem:[#allocation5 + $0x170] sm:$0xff] }
  0x22   :  { %152 = vmatpush1.msra.mxu0 %v113_v11  ;;  %265 = vmatpush1.msra.mxu1 %v115_v12  ;;  %v102_v21 = vld [vmem:[#allocation5 + $0x148] sm:$0xff]  ;;  %v104_v22 = vld [vmem:[#allocation5 + $0x158] sm:$0xff]  ;;  %v101_v23 = vld [vmem:[#allocation5 + $0x140] sm:$0xff] }
  0x23   :  { %153 = vmatprep.subr.mxu0 %v110_v13  ;;  %266 = vmatprep.subr.mxu1 %v112_v14  ;;  %v103_v24 = vld [vmem:[#allocation5 + $0x150] sm:$0xff]  ;;  %v98_v25 = vld [vmem:[#allocation5 + $0x128] sm:$0xff]  ;;  %v100_v26 = vld [vmem:[#allocation5 + $0x138] sm:$0xff] }
  0x24   :  { %154 = vmatpush1.msra.mxu0 %v109_v15  ;;  %267 = vmatpush1.msra.mxu1 %v111_v16  ;;  %v97_v27 = vld [vmem:[#allocation5 + $0x120] sm:$0xff]  ;;  %v99_v28 = vld [vmem:[#allocation5 + $0x130] sm:$0xff]  ;;  %v94_v29 = vld [vmem:[#allocation5 + $0x108] sm:$0xff] }
  0x25   :  { %155 = vmatprep.subr.mxu0 %v106_v17  ;;  %268 = vmatprep.subr.mxu1 %v108_v18  ;;  %v96_v30 = vld [vmem:[#allocation5 + $0x118] sm:$0xff]  ;;  %v93_v31 = vld [vmem:[#allocation5 + $0x100] sm:$0xff]  ;;  %v95_v32 = vld [vmem:[#allocation5 + $0x110] sm:$0xff] }
  0x26   :  { %156 = vmatpush1.msra.mxu0 %v105_v19  ;;  %269 = vmatpush1.msra.mxu1 %v107_v20  ;;  %v90_v33 = vld [vmem:[#allocation5 + $0xe8] sm:$0xff]  ;;  %v92_v34 = vld [vmem:[#allocation5 + $0xf8] sm:$0xff]  ;;  %v89_v35 = vld [vmem:[#allocation5 + $0xe0] sm:$0xff] }
  0x27   :  { %157 = vmatprep.subr.mxu0 %v102_v21  ;;  %270 = vmatprep.subr.mxu1 %v104_v22  ;;  %v91_v36 = vld [vmem:[#allocation5 + $0xf0] sm:$0xff]  ;;  %v86_v37 = vld [vmem:[#allocation5 + $0xc8] sm:$0xff]  ;;  %v88_v38 = vld [vmem:[#allocation5 + $0xd8] sm:$0xff] }
  0x28   :  { %158 = vmatpush1.msra.mxu0 %v101_v23  ;;  %271 = vmatpush1.msra.mxu1 %v103_v24  ;;  %v85_v39 = vld [vmem:[#allocation5 + $0xc0] sm:$0xff]  ;;  %v87_v40 = vld [vmem:[#allocation5 + $0xd0] sm:$0xff]  ;;  %v82_v41 = vld [vmem:[#allocation5 + $0xa8] sm:$0xff] }
  0x29   :  { %159 = vmatprep.subr.mxu0 %v98_v25  ;;  %272 = vmatprep.subr.mxu1 %v100_v26  ;;  %v84_v42 = vld [vmem:[#allocation5 + $0xb8] sm:$0xff]  ;;  %v81_v43 = vld [vmem:[#allocation5 + $0xa0] sm:$0xff]  ;;  %v83_v44 = vld [vmem:[#allocation5 + $0xb0] sm:$0xff] }
  0x2a   :  { %160 = vmatpush1.msra.mxu0 %v97_v27  ;;  %273 = vmatpush1.msra.mxu1 %v99_v28  ;;  %v78_v45 = vld [vmem:[#allocation5 + $0x88] sm:$0xff]  ;;  %v80_v46 = vld [vmem:[#allocation5 + $0x98] sm:$0xff]  ;;  %v77_v47 = vld [vmem:[#allocation5 + $0x80] sm:$0xff] }
  0x2b   :  { %161 = vmatprep.subr.mxu0 %v94_v29  ;;  %274 = vmatprep.subr.mxu1 %v96_v30  ;;  %v79_v48 = vld [vmem:[#allocation5 + $0x90] sm:$0xff]  ;;  %v74_v49 = vld [vmem:[#allocation5 + $0x68] sm:$0xff]  ;;  %v76_v50 = vld [vmem:[#allocation5 + $0x78] sm:$0xff] }
  0x2c   :  { %162 = vmatpush1.msra.mxu0 %v93_v31  ;;  %275 = vmatpush1.msra.mxu1 %v95_v32  ;;  %v73_v51 = vld [vmem:[#allocation5 + $0x60] sm:$0xff]  ;;  %v75_v52 = vld [vmem:[#allocation5 + $0x70] sm:$0xff]  ;;  %v70_v53 = vld [vmem:[#allocation5 + $0x48] sm:$0xff] }
  0x2d   :  { %163 = vmatprep.subr.mxu0 %v90_v33  ;;  %276 = vmatprep.subr.mxu1 %v92_v34  ;;  %v72_v54 = vld [vmem:[#allocation5 + $0x58] sm:$0xff]  ;;  %v69_v55 = vld [vmem:[#allocation5 + $0x40] sm:$0xff]  ;;  %v71_v56 = vld [vmem:[#allocation5 + $0x50] sm:$0xff] }
  0x2e   :  { %164 = vmatpush1.msra.mxu0 %v89_v35  ;;  %277 = vmatpush1.msra.mxu1 %v91_v36  ;;  %v66_v57 = vld [vmem:[#allocation5 + $0x28] sm:$0xff]  ;;  %v68_v58 = vld [vmem:[#allocation5 + $0x38] sm:$0xff]  ;;  %v65_v59 = vld [vmem:[#allocation5 + $0x20] sm:$0xff] }
  0x2f   :  { %165 = vmatprep.subr.mxu0 %v86_v37  ;;  %278 = vmatprep.subr.mxu1 %v88_v38  ;;  %v67_v60 = vld [vmem:[#allocation5 + $0x30] sm:$0xff]  ;;  %v62_v61 = vld [vmem:[#allocation5 + $0x8] sm:$0xff]  ;;  %v64_v62 = vld [vmem:[#allocation5 + $0x18] sm:$0xff] }
  0x30   :  { %166 = vmatpush1.msra.mxu0 %v85_v39  ;;  %279 = vmatpush1.msra.mxu1 %v87_v40  ;;  %v61_v63 = vld [vmem:[#allocation5] sm:$0xff]  ;;  %v63_v1 = vld [vmem:[#allocation5 + $0x10] sm:$0xff]  ;;  %v2191_v3 = vld [vmem:[#allocation7 + $0x1e8] sm:$0xff] }
  0x31   :  { %167 = vmatprep.subr.mxu0 %v82_v41  ;;  %280 = vmatprep.subr.mxu1 %v84_v42  ;;  %v53_v2 = vld [vmem:[%s3161_s0] sm:$0xff]  ;;  %3255 = vst [vmem:[#allocation11_spill] sm:$0xff] %v2191_v3  ;;  %v2193_v4 = vld [vmem:[#allocation7 + $0x1f8] sm:$0xff]  ;;  %v2197_v6 = vld [vmem:[#allocation7 + $0x1f0] sm:$0xff] }
  0x32   :  { %168 = vmatpush1.msra.mxu0 %v81_v43  ;;  %281 = vmatpush1.msra.mxu1 %v83_v44  ;;  %3256 = vst [vmem:[#allocation12_spill] sm:$0xff] %v2193_v4  ;;  %v2195_v5 = vld [vmem:[#allocation7 + $0x1e0] sm:$0xff]  ;;  %v2199_v7 = vld [vmem:[#allocation7 + $0x1c8] sm:$0xff]  ;;  %v2201_v8 = vld [vmem:[#allocation7 + $0x1d8] sm:$0xff] }
  0x33   :  { %169 = vmatprep.subr.mxu0 %v78_v45  ;;  %282 = vmatprep.subr.mxu1 %v80_v46  ;;  %v2207_v9 = vld [vmem:[#allocation7 + $0x1c0] sm:$0xff]  ;;  %v2209_v10 = vld [vmem:[#allocation7 + $0x1d0] sm:$0xff]  ;;  %v54_v11 = vld [vmem:[%s3161_s0 + $0x8] sm:$0xff] }
  0x34   :  { %170 = vmatpush1.msra.mxu0 %v77_v47  ;;  %283 = vmatpush1.msra.mxu1 %v79_v48  ;;  %v2218_v12 = vld [vmem:[#allocation7 + $0x1a8] sm:$0xff]  ;;  %v2220_v13 = vld [vmem:[#allocation7 + $0x1b8] sm:$0xff]  ;;  %v2224_v14 = vld [vmem:[#allocation7 + $0x1a0] sm:$0xff] }
  0x35   :  { %171 = vmatprep.subr.mxu0 %v74_v49  ;;  %284 = vmatprep.subr.mxu1 %v76_v50  ;;  %v2226_v15 = vld [vmem:[#allocation7 + $0x1b0] sm:$0xff]  ;;  %v2228_v16 = vld [vmem:[#allocation7 + $0x188] sm:$0xff]  ;;  %v2230_v17 = vld [vmem:[#allocation7 + $0x198] sm:$0xff] }
  0x36   :  { %172 = vmatpush1.msra.mxu0 %v73_v51  ;;  %285 = vmatpush1.msra.mxu1 %v75_v52  ;;  %v2236_v18 = vld [vmem:[#allocation7 + $0x180] sm:$0xff]  ;;  %v2238_v19 = vld [vmem:[#allocation7 + $0x190] sm:$0xff]  ;;  %v2247_v21 = vld [vmem:[#allocation7 + $0x168] sm:$0xff] }
  0x37   :  { %173 = vmatprep.subr.mxu0 %v70_v53  ;;  %286 = vmatprep.subr.mxu1 %v72_v54  ;;  %v55_v20 = vld [vmem:[%s3161_s0 + $0x10] sm:$0xff]  ;;  %v2249_v22 = vld [vmem:[#allocation7 + $0x178] sm:$0xff]  ;;  %v2253_v23 = vld [vmem:[#allocation7 + $0x160] sm:$0xff] }
  0x38   :  { %174 = vmatpush1.msra.mxu0 %v69_v55  ;;  %287 = vmatpush1.msra.mxu1 %v71_v56  ;;  %v2255_v24 = vld [vmem:[#allocation7 + $0x170] sm:$0xff]  ;;  %v2257_v25 = vld [vmem:[#allocation7 + $0x148] sm:$0xff]  ;;  %v2259_v26 = vld [vmem:[#allocation7 + $0x158] sm:$0xff] }
  0x39   :  { %175 = vmatprep.subr.mxu0 %v66_v57  ;;  %288 = vmatprep.subr.mxu1 %v68_v58  ;;  %v2265_v27 = vld [vmem:[#allocation7 + $0x140] sm:$0xff]  ;;  %v2267_v28 = vld [vmem:[#allocation7 + $0x150] sm:$0xff]  ;;  %v56_v29 = vld [vmem:[%s3161_s0 + $0x18] sm:$0xff] }
  0x3a   :  { %176 = vmatpush1.msra.mxu0 %v65_v59  ;;  %289 = vmatpush1.msra.mxu1 %v67_v60  ;;  %v2276_v30 = vld [vmem:[#allocation7 + $0x128] sm:$0xff]  ;;  %v2278_v31 = vld [vmem:[#allocation7 + $0x138] sm:$0xff]  ;;  %v2282_v32 = vld [vmem:[#allocation7 + $0x120] sm:$0xff] }
  0x3b   :  { %177 = vmatprep.subr.mxu0 %v62_v61  ;;  %290 = vmatprep.subr.mxu1 %v64_v62  ;;  %v2284_v33 = vld [vmem:[#allocation7 + $0x130] sm:$0xff]  ;;  %v2286_v34 = vld [vmem:[#allocation7 + $0x108] sm:$0xff]  ;;  %v2288_v35 = vld [vmem:[#allocation7 + $0x118] sm:$0xff] }
  0x3c   :  { %178 = vmatpush1.msra.mxu0 %v61_v63  ;;  %291 = vmatpush1.msra.mxu1 %v63_v1  ;;  %v2294_v36 = vld [vmem:[#allocation7 + $0x100] sm:$0xff]  ;;  %v2296_v37 = vld [vmem:[#allocation7 + $0x110] sm:$0xff]  ;;  %v2305_v39 = vld [vmem:[#allocation7 + $0xe8] sm:$0xff] }
  0x3d   :  { %212 = vmatmul.mubr.f32.vlgmr.msra.gmra.mxu0 %v53_v2  ;;  %325 = vmatmul.mubr.f32.vlgmr.msra.gmra.mxu1 %v53_v2  ;;  %v57_v38 = vld [vmem:[%s3161_s0 + $0x20] sm:$0xff]  ;;  %v2307_v40 = vld [vmem:[#allocation7 + $0xf8] sm:$0xff]  ;;  %v2313_v42 = vld [vmem:[#allocation7 + $0xf0] sm:$0xff] }
  0x3e   :  { %475 = vmatprep.subr.mxu0 %v2191_v3  ;;  %546 = vmatprep.subr.mxu1 %v2193_v4  ;;  %v2311_v41 = vld [vmem:[#allocation7 + $0xe0] sm:$0xff]  ;;  %v2315_v43 = vld [vmem:[#allocation7 + $0xc8] sm:$0xff]  ;;  %v2317_v44 = vld [vmem:[#allocation7 + $0xd8] sm:$0xff] }
  0x3f   :  { %476 = vmatpush1.msra.mxu0 %v2195_v5  ;;  %547 = vmatpush1.msra.mxu1 %v2197_v6  ;;  %v2323_v45 = vld [vmem:[#allocation7 + $0xc0] sm:$0xff]  ;;  %v2325_v46 = vld [vmem:[#allocation7 + $0xd0] sm:$0xff]  ;;  %v58_v47 = vld [vmem:[%s3161_s0 + $0x28] sm:$0xff] }
  0x40   :  { %477 = vmatprep.subr.mxu0 %v2199_v7  ;;  %548 = vmatprep.subr.mxu1 %v2201_v8  ;;  %v2334_v48 = vld [vmem:[#allocation7 + $0xa8] sm:$0xff]  ;;  %v2336_v49 = vld [vmem:[#allocation7 + $0xb8] sm:$0xff]  ;;  %v2340_v50 = vld [vmem:[#allocation7 + $0xa0] sm:$0xff] }
  0x41   :  { %217 = vmatprep.mubr.f32.mxu0 %v3167_v0  ;;  %330 = vmatprep.mubr.f32.mxu1 %v3167_v0  ;;  %v2342_v51 = vld [vmem:[#allocation7 + $0xb0] sm:$0xff]  ;;  %v2344_v52 = vld [vmem:[#allocation7 + $0x88] sm:$0xff]  ;;  %v2346_v53 = vld [vmem:[#allocation7 + $0x98] sm:$0xff] }
  0x42   :  { %478 = vmatpush1.msra.mxu0 %v2207_v9  ;;  %549 = vmatpush1.msra.mxu1 %v2209_v10  ;;  %3257 = vst [vmem:[#allocation13_spill] sm:$0xff] %v2344_v52  ;;  %3258 = vst [vmem:[#allocation14_spill] sm:$0xff] %v2346_v53  ;;  %v2352_v54 = vld [vmem:[#allocation7 + $0x80] sm:$0xff]  ;;  %v2354_v55 = vld [vmem:[#allocation7 + $0x90] sm:$0xff] }
  0x43   :  { %218 = vmatmul.mubr.f32.gmra.mxu0 %v54_v11  ;;  %331 = vmatmul.mubr.f32.gmra.mxu1 %v54_v11  ;;  %3259 = vst [vmem:[#allocation15_spill] sm:$0xff] %v2352_v54  ;;  %3260 = vst [vmem:[#allocation16_spill] sm:$0xff] %v2354_v55  ;;  %v59_v56 = vld [vmem:[%s3161_s0 + $0x30] sm:$0xff]  ;;  %v2363_v57 = vld [vmem:[#allocation7 + $0x68] sm:$0xff] }
  0x44   :  { %479 = vmatprep.subr.mxu0 %v2218_v12  ;;  %550 = vmatprep.subr.mxu1 %v2220_v13  ;;  %3261 = vst [vmem:[#allocation17_spill] sm:$0xff] %v2363_v57  ;;  %v2365_v58 = vld [vmem:[#allocation7 + $0x78] sm:$0xff]  ;;  %v2369_v59 = vld [vmem:[#allocation7 + $0x60] sm:$0xff]  ;;  %v2371_v60 = vld [vmem:[#allocation7 + $0x70] sm:$0xff] }
  0x45   :  { %480 = vmatpush1.msra.mxu0 %v2224_v14  ;;  %551 = vmatpush1.msra.mxu1 %v2226_v15  ;;  %3262 = vst [vmem:[#allocation18_spill] sm:$0xff] %v2365_v58  ;;  %3263 = vst [vmem:[#allocation19_spill] sm:$0xff] %v2369_v59  ;;  %v2373_v61 = vld [vmem:[#allocation7 + $0x48] sm:$0xff]  ;;  %v2375_v62 = vld [vmem:[#allocation7 + $0x58] sm:$0xff] }
  0x46   :  { %481 = vmatprep.subr.mxu0 %v2228_v16  ;;  %552 = vmatprep.subr.mxu1 %v2230_v17  ;;  %3264 = vst [vmem:[#allocation20_spill] sm:$0xff] %v2371_v60  ;;  %3265 = vst [vmem:[#allocation21_spill] sm:$0xff] %v2373_v61  ;;  %v2381_v63 = vld [vmem:[#allocation7 + $0x40] sm:$0xff]  ;;  %v2383_v1 = vld [vmem:[#allocation7 + $0x50] sm:$0xff] }
  0x47   :  { %223 = vmatprep.mubr.f32.mxu0 %v3167_v0  ;;  %336 = vmatprep.mubr.f32.mxu1 %v3167_v0  ;;  %3266 = vst [vmem:[#allocation22_spill] sm:$0xff] %v2375_v62  ;;  %3267 = vst [vmem:[#allocation23_spill] sm:$0xff] %v2381_v63  ;;  %v60_v2 = vld [vmem:[%s3161_s0 + $0x38] sm:$0xff]  ;;  %v2392_v11 = vld [vmem:[#allocation7 + $0x28] sm:$0xff] }
  0x48   :  { %482 = vmatpush1.msra.mxu0 %v2236_v18  ;;  %553 = vmatpush1.msra.mxu1 %v2238_v19  ;;  %3268 = vst [vmem:[#allocation24_spill] sm:$0xff] %v2383_v1  ;;  %3269 = vst [vmem:[#allocation25_spill] sm:$0xff] %v2392_v11 }
  0x49   :  { %224 = vmatmul.mubr.f32.gmra.mxu0 %v55_v20  ;;  %337 = vmatmul.mubr.f32.gmra.mxu1 %v55_v20  ;;  %v2394_v20 = vld [vmem:[#allocation7 + $0x38] sm:$0xff] }
  0x4a   :  { %483 = vmatprep.subr.mxu0 %v2247_v21  ;;  %554 = vmatprep.subr.mxu1 %v2249_v22  ;;  %3270 = vst [vmem:[#allocation26_spill] sm:$0xff] %v2394_v20 }
  0x4b   :  { %484 = vmatpush1.msra.mxu0 %v2253_v23  ;;  %555 = vmatpush1.msra.mxu1 %v2255_v24 }
  0x4c   :  { %485 = vmatprep.subr.mxu0 %v2257_v25  ;;  %556 = vmatprep.subr.mxu1 %v2259_v26 }
  0x4d   :  { %229 = vmatprep.mubr.f32.mxu0 %v3167_v0  ;;  %342 = vmatprep.mubr.f32.mxu1 %v3167_v0 }
  0x4e   :  { %486 = vmatpush1.msra.mxu0 %v2265_v27  ;;  %557 = vmatpush1.msra.mxu1 %v2267_v28 }
  0x4f   :  { %230 = vmatmul.mubr.f32.gmra.mxu0 %v56_v29  ;;  %343 = vmatmul.mubr.f32.gmra.mxu1 %v56_v29  ;;  %v2398_v29 = vld [vmem:[#allocation7 + $0x20] sm:$0xff] }
  0x50   :  { %487 = vmatprep.subr.mxu0 %v2276_v30  ;;  %558 = vmatprep.subr.mxu1 %v2278_v31  ;;  %3271 = vst [vmem:[#allocation27_spill] sm:$0xff] %v2398_v29 }
  0x51   :  { %488 = vmatpush1.msra.mxu0 %v2282_v32  ;;  %559 = vmatpush1.msra.mxu1 %v2284_v33 }
  0x52   :  { %489 = vmatprep.subr.mxu0 %v2286_v34  ;;  %560 = vmatprep.subr.mxu1 %v2288_v35 }
  0x53   :  { %235 = vmatprep.mubr.f32.mxu0 %v3167_v0  ;;  %348 = vmatprep.mubr.f32.mxu1 %v3167_v0 }
  0x54   :  { %490 = vmatpush1.msra.mxu0 %v2294_v36  ;;  %561 = vmatpush1.msra.mxu1 %v2296_v37 }
  0x55   :  { %236 = vmatmul.mubr.f32.gmra.mxu0 %v57_v38  ;;  %349 = vmatmul.mubr.f32.gmra.mxu1 %v57_v38  ;;  %v2400_v38 = vld [vmem:[#allocation7 + $0x30] sm:$0xff] }
  0x56   :  { %491 = vmatprep.subr.mxu0 %v2305_v39  ;;  %562 = vmatprep.subr.mxu1 %v2307_v40  ;;  %3272 = vst [vmem:[#allocation28_spill] sm:$0xff] %v2400_v38 }
  0x57   :  { %492 = vmatpush1.msra.mxu0 %v2311_v41  ;;  %563 = vmatpush1.msra.mxu1 %v2313_v42 }
  0x58   :  { %493 = vmatprep.subr.mxu0 %v2315_v43  ;;  %564 = vmatprep.subr.mxu1 %v2317_v44 }
  0x59   :  { %241 = vmatprep.mubr.f32.mxu0 %v3167_v0  ;;  %354 = vmatprep.mubr.f32.mxu1 %v3167_v0 }
  0x5a   :  { %494 = vmatpush1.msra.mxu0 %v2323_v45  ;;  %565 = vmatpush1.msra.mxu1 %v2325_v46 }
  0x5b   :  { %242 = vmatmul.mubr.f32.gmra.mxu0 %v58_v47  ;;  %355 = vmatmul.mubr.f32.gmra.mxu1 %v58_v47  ;;  %v2402_v47 = vld [vmem:[#allocation7 + $0x8] sm:$0xff] }
  0x5c   :  { %495 = vmatprep.subr.mxu0 %v2334_v48  ;;  %566 = vmatprep.subr.mxu1 %v2336_v49  ;;  %3273 = vst [vmem:[#allocation29_spill] sm:$0xff] %v2402_v47 }
  0x5d   :  { %496 = vmatpush1.msra.mxu0 %v2340_v50  ;;  %567 = vmatpush1.msra.mxu1 %v2342_v51 }
  0x5e   :  { %497 = vmatprep.subr.mxu0 %v2344_v52  ;;  %568 = vmatprep.subr.mxu1 %v2346_v53 }
  0x5f   :  { %247 = vmatprep.mubr.f32.mxu0 %v3167_v0  ;;  %360 = vmatprep.mubr.f32.mxu1 %v3167_v0 }
  0x60   :  { %498 = vmatpush1.msra.mxu0 %v2352_v54  ;;  %569 = vmatpush1.msra.mxu1 %v2354_v55 }
  0x61   :  { %248 = vmatmul.mubr.f32.gmra.mxu0 %v59_v56  ;;  %361 = vmatmul.mubr.f32.gmra.mxu1 %v59_v56  ;;  %v2404_v56 = vld [vmem:[#allocation7 + $0x18] sm:$0xff] }
  0x62   :  { %499 = vmatprep.subr.mxu0 %v2363_v57  ;;  %570 = vmatprep.subr.mxu1 %v2365_v58  ;;  %3274 = vst [vmem:[#allocation30_spill] sm:$0xff] %v2404_v56 }
  0x63   :  { %500 = vmatpush1.msra.mxu0 %v2369_v59  ;;  %571 = vmatpush1.msra.mxu1 %v2371_v60 }
  0x64   :  { %501 = vmatprep.subr.mxu0 %v2373_v61  ;;  %572 = vmatprep.subr.mxu1 %v2375_v62 }
  0x65   :  { %253 = vmatprep.mubr.f32.mxu0 %v3167_v0  ;;  %366 = vmatprep.mubr.f32.mxu1 %v3167_v0  ;;  %v2408_v0 = vld [vmem:[#allocation7] sm:$0xff] }
  0x66   :  { %502 = vmatpush1.msra.mxu0 %v2381_v63  ;;  %573 = vmatpush1.msra.mxu1 %v2383_v1  ;;  %3275 = vst [vmem:[#allocation31_spill] sm:$0xff] %v2408_v0  ;;  %v2412_v1 = vld [vmem:[#allocation7 + $0x10] sm:$0xff] }
  0x67   :  { %254 = vmatmul.mubr.f32.gmra.mxu0 %v60_v2  ;;  %367 = vmatmul.mubr.f32.gmra.mxu1 %v60_v2  ;;  %3276 = vst [vmem:[#allocation32_spill] sm:$0xff] %v2412_v1  ;;  %v3277_v2 = vmov 0.0  }
  0x68   :  { %503 = vmatprep.subr.mxu0 %v2392_v11  ;;  %574 = vmatprep.subr.mxu1 %v2394_v20 }
  0x69   :  { %504 = vmatpush1.msra.mxu0 %v2398_v29  ;;  %575 = vmatpush1.msra.mxu1 %v2400_v38 }
  0x6a   :  { %505 = vmatprep.subr.mxu0 %v2402_v47  ;;  %576 = vmatprep.subr.mxu1 %v2404_v56 }
  0x6b   :  { %506 = vmatpush1.msra.mxu0 %v2408_v0  ;;  %539 = vmatprep.mubr.f32.mxu0 %v3277_v2 }
  0x6c   :  { %577 = vmatpush1.msra.mxu1 %v2412_v1  ;;  %610 = vmatprep.mubr.f32.mxu1 %v3277_v2 }
  0x6d   :  { %540 = vmatmul.mubr.f32.vlgmr.msra.gmra.mxu0 %v3277_v2  ;;  %611 = vmatmul.mubr.f32.vlgmr.msra.gmra.mxu1 %v3277_v2 }
  0x6e   :  { %649 = vmatprep.subr.mxu0 %v2191_v3  ;;  %720 = vmatprep.subr.mxu1 %v2193_v4 }
  0x6f   :  { %650 = vmatpush1.msra.mxu0 %v2195_v5  ;;  %721 = vmatpush1.msra.mxu1 %v2197_v6 }
  0x70   :  { %651 = vmatprep.subr.mxu0 %v2199_v7  ;;  %722 = vmatprep.subr.mxu1 %v2201_v8 }
  0x71   :  { %652 = vmatpush1.msra.mxu0 %v2207_v9  ;;  %723 = vmatpush1.msra.mxu1 %v2209_v10 }
  0x72   :  { %653 = vmatprep.subr.mxu0 %v2218_v12  ;;  %724 = vmatprep.subr.mxu1 %v2220_v13 }
  0x73   :  { %654 = vmatpush1.msra.mxu0 %v2224_v14  ;;  %725 = vmatpush1.msra.mxu1 %v2226_v15 }
  0x74   :  { %655 = vmatprep.subr.mxu0 %v2228_v16  ;;  %726 = vmatprep.subr.mxu1 %v2230_v17 }
  0x75   :  { %656 = vmatpush1.msra.mxu0 %v2236_v18  ;;  %727 = vmatpush1.msra.mxu1 %v2238_v19 }
  0x76   :  { %657 = vmatprep.subr.mxu0 %v2247_v21  ;;  %728 = vmatprep.subr.mxu1 %v2249_v22 }
  0x77   :  { %658 = vmatpush1.msra.mxu0 %v2253_v23  ;;  %729 = vmatpush1.msra.mxu1 %v2255_v24 }
  0x78   :  { %659 = vmatprep.subr.mxu0 %v2257_v25  ;;  %730 = vmatprep.subr.mxu1 %v2259_v26 }
  0x79   :  { %660 = vmatpush1.msra.mxu0 %v2265_v27  ;;  %731 = vmatpush1.msra.mxu1 %v2267_v28 }
  0x7a   :  { %661 = vmatprep.subr.mxu0 %v2276_v30  ;;  %732 = vmatprep.subr.mxu1 %v2278_v31 }
  0x7b   :  { %662 = vmatpush1.msra.mxu0 %v2282_v32  ;;  %733 = vmatpush1.msra.mxu1 %v2284_v33 }
  0x7c   :  { %663 = vmatprep.subr.mxu0 %v2286_v34  ;;  %734 = vmatprep.subr.mxu1 %v2288_v35 }
  0x7d   :  { %664 = vmatpush1.msra.mxu0 %v2294_v36  ;;  %735 = vmatpush1.msra.mxu1 %v2296_v37 }
  0x7e   :  { %665 = vmatprep.subr.mxu0 %v2305_v39  ;;  %736 = vmatprep.subr.mxu1 %v2307_v40 }
  0x7f   :  { %666 = vmatpush1.msra.mxu0 %v2311_v41  ;;  %737 = vmatpush1.msra.mxu1 %v2313_v42 }
  0x80   :  { %667 = vmatprep.subr.mxu0 %v2315_v43  ;;  %738 = vmatprep.subr.mxu1 %v2317_v44 }
  0x81   :  { %668 = vmatpush1.msra.mxu0 %v2323_v45  ;;  %739 = vmatpush1.msra.mxu1 %v2325_v46 }
  0x82   :  { %669 = vmatprep.subr.mxu0 %v2334_v48  ;;  %740 = vmatprep.subr.mxu1 %v2336_v49 }
  0x83   :  { %670 = vmatpush1.msra.mxu0 %v2340_v50  ;;  %741 = vmatpush1.msra.mxu1 %v2342_v51 }
  0x84   :  { %671 = vmatprep.subr.mxu0 %v2344_v52  ;;  %742 = vmatprep.subr.mxu1 %v2346_v53  ;;  %v3278_v52 = vld [vmem:[#allocation24_spill] sm:$0xff] }
  0x85   :  { %672 = vmatpush1.msra.mxu0 %v2352_v54  ;;  %743 = vmatpush1.msra.mxu1 %v2354_v55 }
  0x86   :  { %673 = vmatprep.subr.mxu0 %v2363_v57  ;;  %744 = vmatprep.subr.mxu1 %v2365_v58 }
  0x87   :  { %674 = vmatpush1.msra.mxu0 %v2369_v59  ;;  %745 = vmatpush1.msra.mxu1 %v2371_v60 }
  0x88   :  { %675 = vmatprep.subr.mxu0 %v2373_v61  ;;  %746 = vmatprep.subr.mxu1 %v2375_v62 }
  0x89   :  { %676 = vmatpush1.msra.mxu0 %v2381_v63  ;;  %747 = vmatpush1.msra.mxu1 %v3278_v52 }
  0x8a   :  { %677 = vmatprep.subr.mxu0 %v2392_v11  ;;  %748 = vmatprep.subr.mxu1 %v2394_v20  ;;  %v127_v20 = vlaneseq }
  0x8b   :  { %678 = vmatpush1.msra.mxu0 %v2398_v29  ;;  %749 = vmatpush1.msra.mxu1 %v2400_v38 }
  0x8c   :  { %679 = vmatprep.subr.mxu0 %v2402_v47  ;;  %750 = vmatprep.subr.mxu1 %v2404_v56  ;;  %v128_v29 = vshrl.u32 %v127_v20, 7 }
  0x8d   :  { %680 = vmatpush1.msra.mxu0 %v2408_v0  ;;  %713 = vmatprep.mubr.f32.mxu0 %v3277_v2  ;;  %v125_v0 = vld [vmem:[%s3164_s3] sm:$0xf] }
  0x8e   :  { %751 = vmatpush1.msra.mxu1 %v2412_v1  ;;  %784 = vmatprep.mubr.f32.mxu1 %v3277_v2  ;;  %v129_v47 = vsub.s32 0, %v128_v29  ;;  %v137_v56 = vsub.s32 2, %v128_v29  ;;  %v133_v2 = vsub.s32 1, %v128_v29 }
  0x8f   :  { %823 = vmatprep.subr.mxu0 %v2191_v3  ;;  %894 = vmatprep.subr.mxu1 %v2193_v4  ;;  %v141_v3 = vsub.s32 3, %v128_v29 }
  0x90   :  { %v130_v63 = vrot.slane %v125_v0, %v129_v47  ;;  %v2501_v4 = vrot.slane %v125_v0, %v137_v56  ;;  %v134_v61 = vrot.slane %v125_v0, %v133_v2 }
  0x91   :  { %v2503_v60 = vrot.slane %v125_v0, %v141_v3 }
  0xfd   :  { %v2490_v11 = vpop.f32.mrf.mxu0  ;;  %v2492_v38 = vpop.f32.mrf.mxu1 }
  0xff   :  { %v2497_v52 = vpop.f32.mrf.mxu0  ;;  %v2499_v1 = vpop.f32.mrf.mxu1 }
 0x103   :  { %v219_v20 = vpop.f32.mrf.mxu0  ;;  %v332_v62 = vpop.f32.mrf.mxu1 }
 0x104   :  { %v2505_v59 = vadd.f32 %v219_v20, %v130_v63  ;;  %v2508_v58 = vadd.f32 %v332_v62, %v2501_v4 }
 0x105   :  { %v221_v57 = vpop.f32.mrf.mxu0  ;;  %v334_v55 = vpop.f32.mrf.mxu1 }
 0x106   :  { %3279 = vst [vmem:[#allocation33_spill] sm:$0xff] %v2505_v59  ;;  %3280 = vst [vmem:[#allocation34_spill] sm:$0xff] %v2508_v58  ;;  %v2510_v54 = vadd.f32 %v221_v57, %v134_v61  ;;  %v2513_v53 = vadd.f32 %v334_v55, %v2503_v60 }
 0x108   :  { %3281 = vst [vmem:[#allocation35_spill] sm:$0xff] %v2510_v54  ;;  %3282 = vst [vmem:[#allocation36_spill] sm:$0xff] %v2513_v53 }
 0x109   :  { %v225_v29 = vpop.f32.mrf.mxu0  ;;  %v338_v47 = vpop.f32.mrf.mxu1 }
 0x10a   :  { %v2515_v56 = vadd.f32 %v225_v29, %v130_v63  ;;  %v2518_v2 = vadd.f32 %v338_v47, %v2501_v4 }
 0x10b   :  { %v227_v0 = vpop.f32.mrf.mxu0  ;;  %v340_v3 = vpop.f32.mrf.mxu1 }
 0x10c   :  { %3283 = vst [vmem:[#allocation37_spill] sm:$0xff] %v2515_v56  ;;  %3284 = vst [vmem:[#allocation38_spill] sm:$0xff] %v2518_v2  ;;  %v2520_v20 = vadd.f32 %v227_v0, %v134_v61  ;;  %v2523_v62 = vadd.f32 %v340_v3, %v2503_v60 }
 0x10e   :  { %3285 = vst [vmem:[#allocation39_spill] sm:$0xff] %v2520_v20  ;;  %3286 = vst [vmem:[#allocation40_spill] sm:$0xff] %v2523_v62 }
 0x10f   :  { %v231_v58 = vpop.f32.mrf.mxu0  ;;  %v344_v57 = vpop.f32.mrf.mxu1 }
 0x110   :  { %v2525_v54 = vadd.f32 %v231_v58, %v130_v63  ;;  %v2528_v55 = vadd.f32 %v344_v57, %v2501_v4 }
 0x111   :  { %v233_v53 = vpop.f32.mrf.mxu0  ;;  %v346_v29 = vpop.f32.mrf.mxu1 }
 0x112   :  { %3287 = vst [vmem:[#allocation41_spill] sm:$0xff] %v2525_v54  ;;  %3288 = vst [vmem:[#allocation42_spill] sm:$0xff] %v2528_v55  ;;  %v2530_v56 = vadd.f32 %v233_v53, %v134_v61  ;;  %v2533_v47 = vadd.f32 %v346_v29, %v2503_v60 }
 0x114   :  { %3289 = vst [vmem:[#allocation43_spill] sm:$0xff] %v2530_v56  ;;  %3290 = vst [vmem:[#allocation44_spill] sm:$0xff] %v2533_v47 }
 0x115   :  { %v237_v2 = vpop.f32.mrf.mxu0  ;;  %v350_v0 = vpop.f32.mrf.mxu1 }
 0x116   :  { %v2535_v20 = vadd.f32 %v237_v2, %v130_v63  ;;  %v2538_v3 = vadd.f32 %v350_v0, %v2501_v4 }
 0x117   :  { %v239_v62 = vpop.f32.mrf.mxu0  ;;  %v352_v58 = vpop.f32.mrf.mxu1 }
 0x118   :  { %3291 = vst [vmem:[#allocation45_spill] sm:$0xff] %v2535_v20  ;;  %3292 = vst [vmem:[#allocation46_spill] sm:$0xff] %v2538_v3  ;;  %v2540_v54 = vadd.f32 %v239_v62, %v134_v61  ;;  %v2543_v57 = vadd.f32 %v352_v58, %v2503_v60 }
 0x11a   :  { %3293 = vst [vmem:[#allocation47_spill] sm:$0xff] %v2540_v54  ;;  %3294 = vst [vmem:[#allocation48_spill] sm:$0xff] %v2543_v57 }
 0x11b   :  { %v243_v55 = vpop.f32.mrf.mxu0  ;;  %v356_v53 = vpop.f32.mrf.mxu1 }
 0x11c   :  { %v2545_v56 = vadd.f32 %v243_v55, %v130_v63  ;;  %v2548_v29 = vadd.f32 %v356_v53, %v2501_v4 }
 0x11d   :  { %v245_v47 = vpop.f32.mrf.mxu0  ;;  %v358_v2 = vpop.f32.mrf.mxu1 }
 0x11e   :  { %3295 = vst [vmem:[#allocation49_spill] sm:$0xff] %v2545_v56  ;;  %3296 = vst [vmem:[#allocation50_spill] sm:$0xff] %v2548_v29  ;;  %v2550_v20 = vadd.f32 %v245_v47, %v134_v61  ;;  %v2553_v0 = vadd.f32 %v358_v2, %v2503_v60 }
 0x120   :  { %3297 = vst [vmem:[#allocation51_spill] sm:$0xff] %v2550_v20  ;;  %3298 = vst [vmem:[#allocation52_spill] sm:$0xff] %v2553_v0 }
 0x121   :  { %v249_v3 = vpop.f32.mrf.mxu0  ;;  %v362_v62 = vpop.f32.mrf.mxu1 }
 0x122   :  { %v2555_v54 = vadd.f32 %v249_v3, %v130_v63  ;;  %v2558_v58 = vadd.f32 %v362_v62, %v2501_v4 }
 0x123   :  { %v251_v57 = vpop.f32.mrf.mxu0  ;;  %v364_v55 = vpop.f32.mrf.mxu1 }
 0x124   :  { %3299 = vst [vmem:[#allocation53_spill] sm:$0xff] %v2555_v54  ;;  %3300 = vst [vmem:[#allocation54_spill] sm:$0xff] %v2558_v58  ;;  %v2560_v56 = vadd.f32 %v251_v57, %v134_v61  ;;  %v2563_v53 = vadd.f32 %v364_v55, %v2503_v60  ;;  %v214_v57 = vadd.f32 %v2490_v11, %v130_v63 }
 0x125   :  { %v216_v55 = vadd.f32 %v2497_v52, %v134_v61 }
 0x126   :  { %3301 = vst [vmem:[#allocation55_spill] sm:$0xff] %v2560_v56  ;;  %3302 = vst [vmem:[#allocation56_spill] sm:$0xff] %v2563_v53 }
 0x127   :  { %v255_v29 = vpop.f32.mrf.mxu0  ;;  %v368_v47 = vpop.f32.mrf.mxu1 }
 0x128   :  { %v2565_v20 = vadd.f32 %v255_v29, %v130_v63  ;;  %v2568_v2 = vadd.f32 %v368_v47, %v2501_v4 }
 0x129   :  { %v257_v0 = vpop.f32.mrf.mxu0  ;;  %v370_v3 = vpop.f32.mrf.mxu1 }
 0x12a   :  { %3303 = vst [vmem:[#allocation57_spill] sm:$0xff] %v2565_v20  ;;  %3304 = vst [vmem:[#allocation58_spill] sm:$0xff] %v2568_v2  ;;  %v2570_v54 = vadd.f32 %v257_v0, %v134_v61  ;;  %v2573_v62 = vadd.f32 %v370_v3, %v2503_v60  ;;  %v329_v0 = vadd.f32 %v2499_v1, %v2503_v60 }
 0x12b   :  { %v327_v3 = vadd.f32 %v2492_v38, %v2501_v4 }
 0x12c   :  { %3305 = vst [vmem:[#allocation59_spill] sm:$0xff] %v2570_v54  ;;  %3306 = vst [vmem:[#allocation60_spill] sm:$0xff] %v2573_v62 }
 0x12d   :  { %v541_v58 = vpop.f32.mrf.mxu0  ;;  %v612_v20 = vpop.f32.mrf.mxu1 }
 0x12e   :  { %v617_v53 = vadd.f32 %v541_v58, %v214_v57  ;;  %v619_v62 = vadd.f32 %v612_v20, %v327_v3  ;;  %v3307_v20 = vld [vmem:[#allocation13_spill] sm:$0xff]  ;;  %v3312_v3 = vld [vmem:[#allocation18_spill] sm:$0xff] }
 0x12f   :  { %v543_v56 = vpop.f32.mrf.mxu0  ;;  %v614_v2 = vpop.f32.mrf.mxu1 }
 0x130   :  { %v1880_v59 = vmul.f32 -1.442695, %v617_v53  ;;  %v618_v29 = vadd.f32 %v543_v56, %v216_v55  ;;  %v620_v54 = vadd.f32 %v614_v2, %v329_v0  ;;  %v3311_v0 = vld [vmem:[#allocation17_spill] sm:$0xff] }
 0x132   :  { %1909 = vpow2.f32 %v1880_v59  ;;  %v1881_v47 = vmul.f32 -1.442695, %v618_v29  ;;  %v1882_v63 = vmul.f32 -1.442695, %v620_v54  ;;  %v3309_v29 = vld [vmem:[#allocation15_spill] sm:$0xff] }
 0x134   :  { %1911 = vpow2.f32 %v1881_v47  ;;  %v3310_v47 = vld [vmem:[#allocation16_spill] sm:$0xff] }
 0x135   :  { %1913 = vpow2.f32 %v1882_v63  ;;  %v3313_v63 = vld [vmem:[#allocation19_spill] sm:$0xff] }
 0x13f   :  { %v1910_v11 = vpop.eup %1909 }
 0x140   :  { %v624_v52 = vadd.f32 1.0, %v1910_v11  ;;  %v3314_v11 = vld [vmem:[#allocation20_spill] sm:$0xff] }
 0x141   :  { %v1912_v61 = vpop.eup %1911 }
 0x142   :  { %1915 = vrcp.f32 %v624_v52  ;;  %v630_v56 = vadd.f32 1.0, %v1912_v61  ;;  %v1914_v59 = vpop.eup %1913  ;;  %v3315_v52 = vld [vmem:[#allocation21_spill] sm:$0xff]  ;;  %v3316_v61 = vld [vmem:[#allocation22_spill] sm:$0xff] }
 0x143   :  { %1917 = vtanh.f32 %v619_v62  ;;  %v637_v55 = vadd.f32 1.0, %v1914_v59  ;;  %v3308_v62 = vld [vmem:[#allocation14_spill] sm:$0xff]  ;;  %v3318_v59 = vld [vmem:[#allocation24_spill] sm:$0xff] }
 0x144   :  { %1919 = vrcp.f32 %v630_v56  ;;  %v3317_v56 = vld [vmem:[#allocation23_spill] sm:$0xff] }
 0x145   :  { %1921 = vrcp.f32 %v637_v55  ;;  %v3322_v55 = vld [vmem:[#allocation28_spill] sm:$0xff] }
 0x14f   :  { %v1916_v58 = vpop.eup %1915 }
 0x150   :  { %v1918_v53 = vpop.eup %1917 }
 0x151   :  { %v1920_v57 = vpop.eup %1919  ;;  %v641_v1 = vmul.f32 %v1918_v53, %v1916_v58  ;;  %v3319_v58 = vld [vmem:[#allocation25_spill] sm:$0xff]  ;;  %v3320_v53 = vld [vmem:[#allocation26_spill] sm:$0xff] }
 0x152   :  { %v640_v60 = vmul.f32 0.0, %v1920_v57  ;;  %v1922_v4 = vpop.eup %1921  ;;  %v3321_v57 = vld [vmem:[#allocation27_spill] sm:$0xff] }
 0x154   :  { %v2581_v2 = vadd.f32 %v641_v1, %v640_v60  ;;  %v3323_v60 = vld [vmem:[#allocation29_spill] sm:$0xff]  ;;  %v3324_v1 = vld [vmem:[#allocation30_spill] sm:$0xff] }
 0x156   :  { %1923 = vtanh.f32 %v2581_v2 }
 0x163   :  { %v1924_v54 = vpop.eup %1923 }
 0x164   :  { %v644_v38 = vmul.f32 %v1924_v54, %v1922_v4  ;;  %v3325_v4 = vld [vmem:[#allocation31_spill] sm:$0xff]  ;;  %v3326_v54 = vmov 0.0  }
 0x166   :  { %714 = vmatmul.mubr.f32.vlgmr.msra.gmra.mxu0 %v644_v38  ;;  %785 = vmatmul.mubr.f32.vlgmr.msra.gmra.mxu1 %v644_v38  ;;  %v3327_v38 = vld [vmem:[#allocation32_spill] sm:$0xff] }
 0x167   :  { %824 = vmatpush1.msra.mxu0 %v2195_v5  ;;  %895 = vmatpush1.msra.mxu1 %v2197_v6 }
 0x168   :  { %825 = vmatprep.subr.mxu0 %v2199_v7  ;;  %896 = vmatprep.subr.mxu1 %v2201_v8 }
 0x169   :  { %826 = vmatpush1.msra.mxu0 %v2207_v9  ;;  %897 = vmatpush1.msra.mxu1 %v2209_v10 }
 0x16a   :  { %827 = vmatprep.subr.mxu0 %v2218_v12  ;;  %898 = vmatprep.subr.mxu1 %v2220_v13 }
 0x16b   :  { %828 = vmatpush1.msra.mxu0 %v2224_v14  ;;  %899 = vmatpush1.msra.mxu1 %v2226_v15 }
 0x16c   :  { %829 = vmatprep.subr.mxu0 %v2228_v16  ;;  %900 = vmatprep.subr.mxu1 %v2230_v17 }
 0x16d   :  { %830 = vmatpush1.msra.mxu0 %v2236_v18  ;;  %901 = vmatpush1.msra.mxu1 %v2238_v19 }
 0x16e   :  { %831 = vmatprep.subr.mxu0 %v2247_v21  ;;  %902 = vmatprep.subr.mxu1 %v2249_v22 }
 0x16f   :  { %832 = vmatpush1.msra.mxu0 %v2253_v23  ;;  %903 = vmatpush1.msra.mxu1 %v2255_v24 }
 0x170   :  { %833 = vmatprep.subr.mxu0 %v2257_v25  ;;  %904 = vmatprep.subr.mxu1 %v2259_v26 }
 0x171   :  { %834 = vmatpush1.msra.mxu0 %v2265_v27  ;;  %905 = vmatpush1.msra.mxu1 %v2267_v28 }
 0x172   :  { %835 = vmatprep.subr.mxu0 %v2276_v30  ;;  %906 = vmatprep.subr.mxu1 %v2278_v31 }
 0x173   :  { %836 = vmatpush1.msra.mxu0 %v2282_v32  ;;  %907 = vmatpush1.msra.mxu1 %v2284_v33 }
 0x174   :  { %837 = vmatprep.subr.mxu0 %v2286_v34  ;;  %908 = vmatprep.subr.mxu1 %v2288_v35 }
 0x175   :  { %838 = vmatpush1.msra.mxu0 %v2294_v36  ;;  %909 = vmatpush1.msra.mxu1 %v2296_v37 }
 0x176   :  { %839 = vmatprep.subr.mxu0 %v2305_v39  ;;  %910 = vmatprep.subr.mxu1 %v2307_v40 }
 0x177   :  { %840 = vmatpush1.msra.mxu0 %v2311_v41  ;;  %911 = vmatpush1.msra.mxu1 %v2313_v42 }
 0x178   :  { %841 = vmatprep.subr.mxu0 %v2315_v43  ;;  %912 = vmatprep.subr.mxu1 %v2317_v44 }
 0x179   :  { %842 = vmatpush1.msra.mxu0 %v2323_v45  ;;  %913 = vmatpush1.msra.mxu1 %v2325_v46 }
 0x17a   :  { %843 = vmatprep.subr.mxu0 %v2334_v48  ;;  %914 = vmatprep.subr.mxu1 %v2336_v49 }
 0x17b   :  { %844 = vmatpush1.msra.mxu0 %v2340_v50  ;;  %915 = vmatpush1.msra.mxu1 %v2342_v51 }
 0x17c   :  { %845 = vmatprep.subr.mxu0 %v3307_v20  ;;  %916 = vmatprep.subr.mxu1 %v3308_v62 }
 0x17d   :  { %846 = vmatpush1.msra.mxu0 %v3309_v29  ;;  %917 = vmatpush1.msra.mxu1 %v3310_v47 }
 0x17e   :  { %847 = vmatprep.subr.mxu0 %v3311_v0  ;;  %918 = vmatprep.subr.mxu1 %v3312_v3  ;;  %v3333_v3 = vld [vmem:[#allocation34_spill] sm:$0xff] }
 0x17f   :  { %848 = vmatpush1.msra.mxu0 %v3313_v63  ;;  %919 = vmatpush1.msra.mxu1 %v3314_v11  ;;  %v3332_v63 = vld [vmem:[#allocation36_spill] sm:$0xff] }
 0x180   :  { %849 = vmatprep.subr.mxu0 %v3315_v52  ;;  %920 = vmatprep.subr.mxu1 %v3316_v61 }
 0x181   :  { %850 = vmatpush1.msra.mxu0 %v3317_v56  ;;  %921 = vmatpush1.msra.mxu1 %v3318_v59  ;;  %v3328_v59 = vld [vmem:[#allocation11_spill] sm:$0xff] }
 0x182   :  { %851 = vmatprep.subr.mxu0 %v3319_v58  ;;  %922 = vmatprep.subr.mxu1 %v3320_v53  ;;  %v3329_v58 = vld [vmem:[#allocation12_spill] sm:$0xff] }
 0x183   :  { %852 = vmatpush1.msra.mxu0 %v3321_v57  ;;  %923 = vmatpush1.msra.mxu1 %v3322_v55  ;;  %v3330_v57 = vld [vmem:[#allocation33_spill] sm:$0xff] }
 0x184   :  { %853 = vmatprep.subr.mxu0 %v3323_v60  ;;  %924 = vmatprep.subr.mxu1 %v3324_v1  ;;  %v3331_v60 = vld [vmem:[#allocation35_spill] sm:$0xff] }
 0x185   :  { %854 = vmatpush1.msra.mxu0 %v3325_v4  ;;  %887 = vmatprep.mubr.f32.mxu0 %v3326_v54 }
 0x186   :  { %925 = vmatpush1.msra.mxu1 %v3327_v38  ;;  %958 = vmatprep.mubr.f32.mxu1 %v3326_v54 }
 0x187   :  { %997 = vmatprep.subr.mxu0 %v3328_v59  ;;  %1068 = vmatprep.subr.mxu1 %v3329_v58 }
 0x226   :  { %v715_v53 = vpop.f32.mrf.mxu0  ;;  %v786_v1 = vpop.f32.mrf.mxu1 }
 0x227   :  { %v791_v56 = vadd.f32 %v715_v53, %v3330_v57  ;;  %v793_v54 = vadd.f32 %v786_v1, %v3333_v3 }
 0x228   :  { %v717_v55 = vpop.f32.mrf.mxu0  ;;  %v788_v11 = vpop.f32.mrf.mxu1 }
 0x229   :  { %v1883_v61 = vmul.f32 -1.442695, %v791_v56  ;;  %v792_v52 = vadd.f32 %v717_v55, %v3331_v60  ;;  %v794_v38 = vadd.f32 %v788_v11, %v3332_v63 }
 0x22b   :  { %1925 = vpow2.f32 %v1883_v61  ;;  %v1884_v4 = vmul.f32 -1.442695, %v792_v52  ;;  %v1885_v0 = vmul.f32 -1.442695, %v794_v38 }
 0x22d   :  { %1927 = vpow2.f32 %v1884_v4 }
 0x22e   :  { %1929 = vtanh.f32 %v793_v54 }
 0x22f   :  { %1931 = vpow2.f32 %v1885_v0 }
 0x238   :  { %v1926_v59 = vpop.eup %1925 }
 0x239   :  { %v798_v47 = vadd.f32 1.0, %v1926_v59 }
 0x23a   :  { %v1928_v58 = vpop.eup %1927 }
 0x23b   :  { %1933 = vrcp.f32 %v798_v47  ;;  %v804_v53 = vadd.f32 1.0, %v1928_v58  ;;  %v1930_v56 = vpop.eup %1929  ;;  %v3355_v47 = vld [vmem:[#allocation39_spill] sm:$0xff]  ;;  %v3356_v58 = vld [vmem:[#allocation40_spill] sm:$0xff] }
 0x23c   :  { %v1932_v57 = vpop.eup %1931 }
 0x23d   :  { %1935 = vrcp.f32 %v804_v53  ;;  %v811_v60 = vadd.f32 1.0, %v1932_v57 }
 0x23f   :  { %1937 = vrcp.f32 %v811_v60 }
 0x248   :  { %v1934_v61 = vpop.eup %1933 }
 0x249   :  { %v815_v55 = vmul.f32 %v1934_v61, %v1930_v56  ;;  %v3357_v56 = vld [vmem:[#allocation38_spill] sm:$0xff] }
 0x24a   :  { %v1936_v52 = vpop.eup %1935 }
 0x24b   :  { %v814_v4 = vmul.f32 %v1936_v52, %v2581_v2 }
 0x24c   :  { %v1938_v3 = vpop.eup %1937 }
 0x24d   :  { %v2655_v63 = vadd.f32 %v815_v55, %v814_v4 }
 0x24f   :  { %1939 = vtanh.f32 %v2655_v63 }
 0x25c   :  { %v1940_v11 = vpop.eup %1939 }
 0x25d   :  { %v818_v1 = vmul.f32 %v1940_v11, %v1938_v3 }
 0x25f   :  { %888 = vmatmul.mubr.f32.vlgmr.msra.gmra.mxu0 %v818_v1  ;;  %959 = vmatmul.mubr.f32.vlgmr.msra.gmra.mxu1 %v818_v1 }
 0x260   :  { %998 = vmatpush1.msra.mxu0 %v2195_v5  ;;  %1069 = vmatpush1.msra.mxu1 %v2197_v6  ;;  %v3334_v5 = vld [vmem:[#allocation16_spill] sm:$0xff]  ;;  %v3335_v6 = vld [vmem:[#allocation17_spill] sm:$0xff] }
 0x261   :  { %999 = vmatprep.subr.mxu0 %v2199_v7  ;;  %1070 = vmatprep.subr.mxu1 %v2201_v8  ;;  %v3336_v7 = vld [vmem:[#allocation18_spill] sm:$0xff]  ;;  %v3337_v8 = vld [vmem:[#allocation19_spill] sm:$0xff] }
 0x262   :  { %1000 = vmatpush1.msra.mxu0 %v2207_v9  ;;  %1071 = vmatpush1.msra.mxu1 %v2209_v10  ;;  %v3338_v9 = vld [vmem:[#allocation20_spill] sm:$0xff]  ;;  %v3339_v10 = vld [vmem:[#allocation21_spill] sm:$0xff] }
 0x263   :  { %1001 = vmatprep.subr.mxu0 %v2218_v12  ;;  %1072 = vmatprep.subr.mxu1 %v2220_v13  ;;  %v3340_v12 = vld [vmem:[#allocation22_spill] sm:$0xff]  ;;  %v3341_v13 = vld [vmem:[#allocation23_spill] sm:$0xff] }
 0x264   :  { %1002 = vmatpush1.msra.mxu0 %v2224_v14  ;;  %1073 = vmatpush1.msra.mxu1 %v2226_v15  ;;  %v3342_v14 = vld [vmem:[#allocation24_spill] sm:$0xff]  ;;  %v3343_v15 = vld [vmem:[#allocation25_spill] sm:$0xff] }
 0x265   :  { %1003 = vmatprep.subr.mxu0 %v2228_v16  ;;  %1074 = vmatprep.subr.mxu1 %v2230_v17  ;;  %v3344_v16 = vld [vmem:[#allocation26_spill] sm:$0xff]  ;;  %v3345_v17 = vld [vmem:[#allocation27_spill] sm:$0xff] }
 0x266   :  { %1004 = vmatpush1.msra.mxu0 %v2236_v18  ;;  %1075 = vmatpush1.msra.mxu1 %v2238_v19  ;;  %v3346_v18 = vld [vmem:[#allocation28_spill] sm:$0xff]  ;;  %v3347_v19 = vld [vmem:[#allocation29_spill] sm:$0xff] }
 0x267   :  { %1005 = vmatprep.subr.mxu0 %v2247_v21  ;;  %1076 = vmatprep.subr.mxu1 %v2249_v22  ;;  %v3348_v21 = vld [vmem:[#allocation30_spill] sm:$0xff]  ;;  %v3349_v22 = vld [vmem:[#allocation31_spill] sm:$0xff] }
 0x268   :  { %1006 = vmatpush1.msra.mxu0 %v2253_v23  ;;  %1077 = vmatpush1.msra.mxu1 %v2255_v24  ;;  %v3350_v23 = vmov 0.0   ;;  %v3351_v24 = vld [vmem:[#allocation32_spill] sm:$0xff] }
 0x269   :  { %1007 = vmatprep.subr.mxu0 %v2257_v25  ;;  %1078 = vmatprep.subr.mxu1 %v2259_v26  ;;  %v2722_v25 = vld [vmem:[#allocation7 + $0x1e8] sm:$0xff]  ;;  %v2725_v26 = vld [vmem:[#allocation7 + $0x1f8] sm:$0xff] }
 0x26a   :  { %1008 = vmatpush1.msra.mxu0 %v2265_v27  ;;  %1079 = vmatpush1.msra.mxu1 %v2267_v28  ;;  %3352 = vst [vmem:[#allocation13_spill] sm:$0xff] %v2722_v25  ;;  %3353 = vst [vmem:[#allocation14_spill] sm:$0xff] %v2725_v26  ;;  %v3354_v28 = vld [vmem:[#allocation37_spill] sm:$0xff] }
 0x26b   :  { %1009 = vmatprep.subr.mxu0 %v2276_v30  ;;  %1080 = vmatprep.subr.mxu1 %v2278_v31 }
 0x26c   :  { %1010 = vmatpush1.msra.mxu0 %v2282_v32  ;;  %1081 = vmatpush1.msra.mxu1 %v2284_v33 }
 0x26d   :  { %1011 = vmatprep.subr.mxu0 %v2286_v34  ;;  %1082 = vmatprep.subr.mxu1 %v2288_v35 }
 0x26e   :  { %1012 = vmatpush1.msra.mxu0 %v2294_v36  ;;  %1083 = vmatpush1.msra.mxu1 %v2296_v37 }
 0x26f   :  { %1013 = vmatprep.subr.mxu0 %v2305_v39  ;;  %1084 = vmatprep.subr.mxu1 %v2307_v40 }
 0x270   :  { %1014 = vmatpush1.msra.mxu0 %v2311_v41  ;;  %1085 = vmatpush1.msra.mxu1 %v2313_v42 }
 0x271   :  { %1015 = vmatprep.subr.mxu0 %v2315_v43  ;;  %1086 = vmatprep.subr.mxu1 %v2317_v44 }
 0x272   :  { %1016 = vmatpush1.msra.mxu0 %v2323_v45  ;;  %1087 = vmatpush1.msra.mxu1 %v2325_v46 }
 0x273   :  { %1017 = vmatprep.subr.mxu0 %v2334_v48  ;;  %1088 = vmatprep.subr.mxu1 %v2336_v49 }
 0x274   :  { %1018 = vmatpush1.msra.mxu0 %v2340_v50  ;;  %1089 = vmatpush1.msra.mxu1 %v2342_v51 }
 0x275   :  { %1019 = vmatprep.subr.mxu0 %v3307_v20  ;;  %1090 = vmatprep.subr.mxu1 %v3308_v62 }
 0x276   :  { %1020 = vmatpush1.msra.mxu0 %v3309_v29  ;;  %1091 = vmatpush1.msra.mxu1 %v3334_v5 }
 0x277   :  { %1021 = vmatprep.subr.mxu0 %v3335_v6  ;;  %1092 = vmatprep.subr.mxu1 %v3336_v7 }
 0x278   :  { %1022 = vmatpush1.msra.mxu0 %v3337_v8  ;;  %1093 = vmatpush1.msra.mxu1 %v3338_v9 }
 0x279   :  { %1023 = vmatprep.subr.mxu0 %v3339_v10  ;;  %1094 = vmatprep.subr.mxu1 %v3340_v12 }
 0x27a   :  { %1024 = vmatpush1.msra.mxu0 %v3341_v13  ;;  %1095 = vmatpush1.msra.mxu1 %v3342_v14 }
 0x27b   :  { %1025 = vmatprep.subr.mxu0 %v3343_v15  ;;  %1096 = vmatprep.subr.mxu1 %v3344_v16 }
 0x27c   :  { %1026 = vmatpush1.msra.mxu0 %v3345_v17  ;;  %1097 = vmatpush1.msra.mxu1 %v3346_v18 }
 0x27d   :  { %1027 = vmatprep.subr.mxu0 %v3347_v19  ;;  %1098 = vmatprep.subr.mxu1 %v3348_v21 }
 0x27e   :  { %1028 = vmatpush1.msra.mxu0 %v3349_v22  ;;  %1061 = vmatprep.mubr.f32.mxu0 %v3350_v23 }
 0x27f   :  { %1099 = vmatpush1.msra.mxu1 %v3351_v24  ;;  %1132 = vmatprep.mubr.f32.mxu1 %v3350_v23 }
 0x280   :  { %1171 = vmatprep.subr.mxu0 %v2722_v25  ;;  %1242 = vmatprep.subr.mxu1 %v2725_v26 }
 0x31f   :  { %v889_v27 = vpop.f32.mrf.mxu0  ;;  %v960_v54 = vpop.f32.mrf.mxu1 }
 0x320   :  { %v965_v30 = vadd.f32 %v889_v27, %v3354_v28  ;;  %v967_v57 = vadd.f32 %v960_v54, %v3357_v56  ;;  %v2751_v56 = vld [vmem:[#allocation7 + $0x1d0] sm:$0xff] }
 0x321   :  { %v891_v31 = vpop.f32.mrf.mxu0  ;;  %v962_v59 = vpop.f32.mrf.mxu1 }
 0x322   :  { %v1886_v2 = vmul.f32 -1.442695, %v965_v30  ;;  %v966_v0 = vadd.f32 %v891_v31, %v3355_v47  ;;  %v968_v53 = vadd.f32 %v962_v59, %v3356_v58  ;;  %v2739_v59 = vld [vmem:[#allocation7 + $0x1f0] sm:$0xff]  ;;  %v2742_v58 = vld [vmem:[#allocation7 + $0x1c8] sm:$0xff] }
 0x324   :  { %1941 = vpow2.f32 %v1886_v2  ;;  %v1887_v38 = vmul.f32 -1.442695, %v966_v0  ;;  %v1888_v61 = vmul.f32 -1.442695, %v968_v53  ;;  %v2748_v53 = vld [vmem:[#allocation7 + $0x1c0] sm:$0xff] }
 0x326   :  { %1943 = vpow2.f32 %v1887_v38  ;;  %v2736_v38 = vld [vmem:[#allocation7 + $0x1e0] sm:$0xff] }
 0x327   :  { %1945 = vtanh.f32 %v967_v57  ;;  %v2754_v57 = vld [vmem:[#allocation7 + $0x1a8] sm:$0xff] }
 0x328   :  { %1947 = vpow2.f32 %v1888_v61  ;;  %v2757_v61 = vld [vmem:[#allocation7 + $0x1b8] sm:$0xff] }
 0x331   :  { %v1942_v55 = vpop.eup %1941 }
 0x332   :  { %v972_v52 = vadd.f32 1.0, %v1942_v55  ;;  %v2760_v55 = vld [vmem:[#allocation7 + $0x1a0] sm:$0xff] }
 0x333   :  { %v1944_v60 = vpop.eup %1943 }
 0x334   :  { %1949 = vrcp.f32 %v972_v52  ;;  %v978_v4 = vadd.f32 1.0, %v1944_v60  ;;  %v1946_v3 = vpop.eup %1945  ;;  %v2763_v52 = vld [vmem:[#allocation7 + $0x1b0] sm:$0xff]  ;;  %v2766_v60 = vld [vmem:[#allocation7 + $0x188] sm:$0xff] }
 0x335   :  { %v1948_v11 = vpop.eup %1947 }
 0x336   :  { %1951 = vrcp.f32 %v978_v4  ;;  %v985_v30 = vadd.f32 1.0, %v1948_v11  ;;  %v2769_v4 = vld [vmem:[#allocation7 + $0x198] sm:$0xff]  ;;  %v2775_v11 = vld [vmem:[#allocation7 + $0x190] sm:$0xff] }
 0x338   :  { %1953 = vrcp.f32 %v985_v30  ;;  %v2787_v30 = vld [vmem:[#allocation7 + $0x170] sm:$0xff] }
 0x339   :  { %3359 = vst [vmem:[#allocation11_spill] sm:$0xff] %v2787_v30 }
 0x341   :  { %v1950_v1 = vpop.eup %1949 }
 0x342   :  { %v989_v27 = vmul.f32 %v1950_v1, %v1946_v3  ;;  %v2772_v3 = vld [vmem:[#allocation7 + $0x180] sm:$0xff]  ;;  %v2778_v1 = vld [vmem:[#allocation7 + $0x168] sm:$0xff] }
 0x343   :  { %v1952_v28 = vpop.eup %1951 }
 0x344   :  { %v988_v31 = vmul.f32 %v1952_v28, %v2655_v63  ;;  %v2745_v63 = vld [vmem:[#allocation7 + $0x1d8] sm:$0xff]  ;;  %v2784_v28 = vld [vmem:[#allocation7 + $0x160] sm:$0xff] }
 0x345   :  { %v1954_v47 = vpop.eup %1953  ;;  %3358 = vst [vmem:[#allocation15_spill] sm:$0xff] %v2784_v28 }
 0x346   :  { %v2733_v2 = vadd.f32 %v989_v27, %v988_v31  ;;  %v2781_v27 = vld [vmem:[#allocation7 + $0x178] sm:$0xff]  ;;  %v2790_v31 = vld [vmem:[#allocation7 + $0x148] sm:$0xff] }
 0x348   :  { %1955 = vtanh.f32 %v2733_v2 }
 0x355   :  { %v1956_v0 = vpop.eup %1955 }
 0x356   :  { %v992_v54 = vmul.f32 %v1956_v0, %v1954_v47  ;;  %v2793_v47 = vld [vmem:[#allocation7 + $0x158] sm:$0xff]  ;;  %v2796_v0 = vld [vmem:[#allocation7 + $0x140] sm:$0xff] }
 0x358   :  { %1062 = vmatmul.mubr.f32.vlgmr.msra.gmra.mxu0 %v992_v54  ;;  %1133 = vmatmul.mubr.f32.vlgmr.msra.gmra.mxu1 %v992_v54  ;;  %v2799_v54 = vld [vmem:[#allocation7 + $0x150] sm:$0xff] }
 0x359   :  { %1172 = vmatpush1.msra.mxu0 %v2736_v38  ;;  %1243 = vmatpush1.msra.mxu1 %v2739_v59 }
 0x35a   :  { %1173 = vmatprep.subr.mxu0 %v2742_v58  ;;  %1244 = vmatprep.subr.mxu1 %v2745_v63 }
 0x35b   :  { %1174 = vmatpush1.msra.mxu0 %v2748_v53  ;;  %1245 = vmatpush1.msra.mxu1 %v2751_v56 }
 0x35c   :  { %1175 = vmatprep.subr.mxu0 %v2754_v57  ;;  %1246 = vmatprep.subr.mxu1 %v2757_v61 }
 0x35d   :  { %1176 = vmatpush1.msra.mxu0 %v2760_v55  ;;  %1247 = vmatpush1.msra.mxu1 %v2763_v52 }
 0x35e   :  { %1177 = vmatprep.subr.mxu0 %v2766_v60  ;;  %1248 = vmatprep.subr.mxu1 %v2769_v4 }
 0x35f   :  { %1178 = vmatpush1.msra.mxu0 %v2772_v3  ;;  %1249 = vmatpush1.msra.mxu1 %v2775_v11 }
 0x360   :  { %1179 = vmatprep.subr.mxu0 %v2778_v1  ;;  %1250 = vmatprep.subr.mxu1 %v2781_v27 }
 0x361   :  { %1180 = vmatpush1.msra.mxu0 %v2784_v28  ;;  %1251 = vmatpush1.msra.mxu1 %v2787_v30  ;;  %v2802_v28 = vld [vmem:[#allocation7 + $0x128] sm:$0xff]  ;;  %v2805_v30 = vld [vmem:[#allocation7 + $0x138] sm:$0xff] }
 0x362   :  { %1181 = vmatprep.subr.mxu0 %v2790_v31  ;;  %1252 = vmatprep.subr.mxu1 %v2793_v47 }
 0x363   :  { %1182 = vmatpush1.msra.mxu0 %v2796_v0  ;;  %1253 = vmatpush1.msra.mxu1 %v2799_v54 }
 0x364   :  { %1183 = vmatprep.subr.mxu0 %v2802_v28  ;;  %1254 = vmatprep.subr.mxu1 %v2805_v30 }
 0x365   :  { %1184 = vmatpush1.msra.mxu0 %v2282_v32  ;;  %1255 = vmatpush1.msra.mxu1 %v2284_v33  ;;  %v3360_v33 = vld [vmem:[#allocation41_spill] sm:$0xff] }
 0x366   :  { %1185 = vmatprep.subr.mxu0 %v2286_v34  ;;  %1256 = vmatprep.subr.mxu1 %v2288_v35 }
 0x367   :  { %1186 = vmatpush1.msra.mxu0 %v2294_v36  ;;  %1257 = vmatpush1.msra.mxu1 %v2296_v37  ;;  %v3361_v37 = vld [vmem:[#allocation43_spill] sm:$0xff] }
 0x368   :  { %1187 = vmatprep.subr.mxu0 %v2305_v39  ;;  %1258 = vmatprep.subr.mxu1 %v2307_v40 }
 0x369   :  { %1188 = vmatpush1.msra.mxu0 %v2311_v41  ;;  %1259 = vmatpush1.msra.mxu1 %v2313_v42 }
 0x36a   :  { %1189 = vmatprep.subr.mxu0 %v2315_v43  ;;  %1260 = vmatprep.subr.mxu1 %v2317_v44  ;;  %v3362_v43 = vld [vmem:[#allocation44_spill] sm:$0xff] }
 0x36b   :  { %1190 = vmatpush1.msra.mxu0 %v2323_v45  ;;  %1261 = vmatpush1.msra.mxu1 %v2325_v46  ;;  %v3363_v45 = vld [vmem:[#allocation42_spill] sm:$0xff] }
 0x36c   :  { %1191 = vmatprep.subr.mxu0 %v2334_v48  ;;  %1262 = vmatprep.subr.mxu1 %v2336_v49 }
 0x36d   :  { %1192 = vmatpush1.msra.mxu0 %v2340_v50  ;;  %1263 = vmatpush1.msra.mxu1 %v2342_v51 }
 0x36e   :  { %1193 = vmatprep.subr.mxu0 %v3307_v20  ;;  %1264 = vmatprep.subr.mxu1 %v3308_v62 }
 0x36f   :  { %1194 = vmatpush1.msra.mxu0 %v3309_v29  ;;  %1265 = vmatpush1.msra.mxu1 %v3334_v5 }
 0x370   :  { %1195 = vmatprep.subr.mxu0 %v3335_v6  ;;  %1266 = vmatprep.subr.mxu1 %v3336_v7 }
 0x371   :  { %1196 = vmatpush1.msra.mxu0 %v3337_v8  ;;  %1267 = vmatpush1.msra.mxu1 %v3338_v9 }
 0x372   :  { %1197 = vmatprep.subr.mxu0 %v3339_v10  ;;  %1268 = vmatprep.subr.mxu1 %v3340_v12 }
 0x373   :  { %1198 = vmatpush1.msra.mxu0 %v3341_v13  ;;  %1269 = vmatpush1.msra.mxu1 %v3342_v14 }
 0x374   :  { %1199 = vmatprep.subr.mxu0 %v3343_v15  ;;  %1270 = vmatprep.subr.mxu1 %v3344_v16  ;;  %v3364_v15 = vld [vmem:[#allocation15_spill] sm:$0xff] }
 0x375   :  { %1200 = vmatpush1.msra.mxu0 %v3345_v17  ;;  %1271 = vmatpush1.msra.mxu1 %v3346_v18  ;;  %v3365_v16 = vld [vmem:[#allocation11_spill] sm:$0xff]  ;;  %v2885_v18 = vld [vmem:[#allocation7 + $0x130] sm:$0xff] }
 0x376   :  { %1201 = vmatprep.subr.mxu0 %v3347_v19  ;;  %1272 = vmatprep.subr.mxu1 %v3348_v21  ;;  %v2882_v17 = vld [vmem:[#allocation7 + $0x120] sm:$0xff]  ;;  %v2888_v19 = vld [vmem:[#allocation7 + $0x108] sm:$0xff]  ;;  %v2891_v21 = vld [vmem:[#allocation7 + $0x118] sm:$0xff] }
 0x377   :  { %1202 = vmatpush1.msra.mxu0 %v3349_v22  ;;  %1235 = vmatprep.mubr.f32.mxu0 %v3350_v23  ;;  %v2894_v22 = vld [vmem:[#allocation7 + $0x100] sm:$0xff] }
 0x378   :  { %1273 = vmatpush1.msra.mxu1 %v3351_v24  ;;  %1306 = vmatprep.mubr.f32.mxu1 %v3350_v23  ;;  %v2897_v24 = vld [vmem:[#allocation7 + $0x110] sm:$0xff] }
 0x379   :  { %1345 = vmatprep.subr.mxu0 %v2722_v25  ;;  %1416 = vmatprep.subr.mxu1 %v2725_v26 }
 0x418   :  { %v1063_v32 = vpop.f32.mrf.mxu0  ;;  %v1134_v40 = vpop.f32.mrf.mxu1 }
 0x419   :  { %v1139_v34 = vadd.f32 %v1063_v32, %v3360_v33  ;;  %v1141_v46 = vadd.f32 %v1134_v40, %v3363_v45  ;;  %v2903_v32 = vld [vmem:[#allocation7 + $0xf8] sm:$0xff]  ;;  %v2906_v33 = vld [vmem:[#allocation7 + $0xe0] sm:$0xff]  ;;  %v2924_v40 = vld [vmem:[#allocation7 + $0xa8] sm:$0xff] }
 0x41a   :  { %v1065_v35 = vpop.f32.mrf.mxu0  ;;  %v1136_v42 = vpop.f32.mrf.mxu1  ;;  %v2939_v45 = vld [vmem:[#allocation7 + $0x98] sm:$0xff] }
 0x41b   :  { %v1889_v36 = vmul.f32 -1.442695, %v1139_v34  ;;  %v1140_v39 = vadd.f32 %v1065_v35, %v3361_v37  ;;  %v1142_v44 = vadd.f32 %v1136_v42, %v3362_v43  ;;  %v2909_v34 = vld [vmem:[#allocation7 + $0xf0] sm:$0xff]  ;;  %v2912_v35 = vld [vmem:[#allocation7 + $0xc8] sm:$0xff]  ;;  %v2918_v37 = vld [vmem:[#allocation7 + $0xc0] sm:$0xff] }
 0x41c   :  { %v2930_v42 = vld [vmem:[#allocation7 + $0xa0] sm:$0xff]  ;;  %v2933_v43 = vld [vmem:[#allocation7 + $0xb0] sm:$0xff] }
 0x41d   :  { %1957 = vpow2.f32 %v1889_v36  ;;  %v1890_v41 = vmul.f32 -1.442695, %v1140_v39  ;;  %v1891_v48 = vmul.f32 -1.442695, %v1142_v44  ;;  %v2915_v36 = vld [vmem:[#allocation7 + $0xd8] sm:$0xff]  ;;  %v2921_v39 = vld [vmem:[#allocation7 + $0xd0] sm:$0xff] }
 0x41e   :  { %v2936_v44 = vld [vmem:[#allocation7 + $0x88] sm:$0xff] }
 0x41f   :  { %1959 = vpow2.f32 %v1890_v41  ;;  %v2927_v41 = vld [vmem:[#allocation7 + $0xb8] sm:$0xff] }
 0x420   :  { %1961 = vtanh.f32 %v1141_v46  ;;  %v2942_v46 = vld [vmem:[#allocation7 + $0x80] sm:$0xff] }
 0x421   :  { %1963 = vpow2.f32 %v1891_v48  ;;  %v2945_v48 = vld [vmem:[#allocation7 + $0x90] sm:$0xff] }
 0x422   :  { %3366 = vst [vmem:[#allocation12_spill] sm:$0xff] %v2945_v48 }
 0x42a   :  { %v1958_v49 = vpop.eup %1957 }
 0x42b   :  { %v1146_v50 = vadd.f32 1.0, %v1958_v49  ;;  %v2948_v49 = vld [vmem:[#allocation7 + $0x68] sm:$0xff] }
 0x42c   :  { %v1960_v51 = vpop.eup %1959  ;;  %3367 = vst [vmem:[#allocation33_spill] sm:$0xff] %v2948_v49 }
 0x42d   :  { %1965 = vrcp.f32 %v1146_v50  ;;  %v1152_v20 = vadd.f32 1.0, %v1960_v51  ;;  %v1962_v62 = vpop.eup %1961  ;;  %v2951_v50 = vld [vmem:[#allocation7 + $0x78] sm:$0xff]  ;;  %v2954_v51 = vld [vmem:[#allocation7 + $0x60] sm:$0xff] }
 0x42e   :  { %v1964_v29 = vpop.eup %1963  ;;  %3368 = vst [vmem:[#allocation35_spill] sm:$0xff] %v2951_v50  ;;  %3369 = vst [vmem:[#allocation36_spill] sm:$0xff] %v2954_v51 }
 0x42f   :  { %1967 = vrcp.f32 %v1152_v20  ;;  %v1159_v8 = vadd.f32 1.0, %v1964_v29  ;;  %v2957_v20 = vld [vmem:[#allocation7 + $0x70] sm:$0xff]  ;;  %v2963_v29 = vld [vmem:[#allocation7 + $0x58] sm:$0xff] }
 0x430   :  { %3370 = vst [vmem:[#allocation34_spill] sm:$0xff] %v2957_v20  ;;  %3372 = vst [vmem:[#allocation17_spill] sm:$0xff] %v2963_v29 }
 0x431   :  { %1969 = vrcp.f32 %v1159_v8  ;;  %v2975_v8 = vld [vmem:[#allocation7 + $0x38] sm:$0xff] }
 0x432   :  { %3376 = vst [vmem:[#allocation21_spill] sm:$0xff] %v2975_v8 }
 0x43a   :  { %v1966_v5 = vpop.eup %1965 }
 0x43b   :  { %v1163_v6 = vmul.f32 %v1966_v5, %v1962_v62  ;;  %v2960_v62 = vld [vmem:[#allocation7 + $0x48] sm:$0xff]  ;;  %v2966_v5 = vld [vmem:[#allocation7 + $0x40] sm:$0xff] }
 0x43c   :  { %v1968_v7 = vpop.eup %1967  ;;  %3371 = vst [vmem:[#allocation16_spill] sm:$0xff] %v2960_v62  ;;  %3373 = vst [vmem:[#allocation18_spill] sm:$0xff] %v2966_v5 }
 0x43d   :  { %v1162_v9 = vmul.f32 %v1968_v7, %v2733_v2  ;;  %v2900_v2 = vld [vmem:[#allocation7 + $0xe8] sm:$0xff] }
 0x43e   :  { %v1970_v12 = vpop.eup %1969  ;;  %v2972_v7 = vld [vmem:[#allocation7 + $0x28] sm:$0xff] }
 0x43f   :  { %v2855_v10 = vadd.f32 %v1163_v6, %v1162_v9  ;;  %v2969_v6 = vld [vmem:[#allocation7 + $0x50] sm:$0xff]  ;;  %3375 = vst [vmem:[#allocation20_spill] sm:$0xff] %v2972_v7  ;;  %v2978_v9 = vld [vmem:[#allocation7 + $0x20] sm:$0xff] }
 0x440   :  { %3374 = vst [vmem:[#allocation19_spill] sm:$0xff] %v2969_v6  ;;  %3377 = vst [vmem:[#allocation22_spill] sm:$0xff] %v2978_v9 }
 0x441   :  { %1971 = vtanh.f32 %v2855_v10 }
 0x44e   :  { %v1972_v13 = vpop.eup %1971 }
 0x44f   :  { %v1166_v14 = vmul.f32 %v1972_v13, %v1970_v12  ;;  %v2981_v12 = vld [vmem:[#allocation7 + $0x30] sm:$0xff]  ;;  %v2984_v13 = vld [vmem:[#allocation7 + $0x8] sm:$0xff] }
 0x450   :  { %3378 = vst [vmem:[#allocation23_spill] sm:$0xff] %v2981_v12  ;;  %3379 = vst [vmem:[#allocation24_spill] sm:$0xff] %v2984_v13 }
 0x451   :  { %1236 = vmatmul.mubr.f32.vlgmr.msra.gmra.mxu0 %v1166_v14  ;;  %1307 = vmatmul.mubr.f32.vlgmr.msra.gmra.mxu1 %v1166_v14  ;;  %v2987_v14 = vld [vmem:[#allocation7 + $0x18] sm:$0xff] }
 0x452   :  { %1346 = vmatpush1.msra.mxu0 %v2736_v38  ;;  %1417 = vmatpush1.msra.mxu1 %v2739_v59  ;;  %3380 = vst [vmem:[#allocation25_spill] sm:$0xff] %v2987_v14 }
 0x453   :  { %1347 = vmatprep.subr.mxu0 %v2742_v58  ;;  %1418 = vmatprep.subr.mxu1 %v2745_v63 }
 0x454   :  { %1348 = vmatpush1.msra.mxu0 %v2748_v53  ;;  %1419 = vmatpush1.msra.mxu1 %v2751_v56 }
 0x455   :  { %1349 = vmatprep.subr.mxu0 %v2754_v57  ;;  %1420 = vmatprep.subr.mxu1 %v2757_v61 }
 0x456   :  { %1350 = vmatpush1.msra.mxu0 %v2760_v55  ;;  %1421 = vmatpush1.msra.mxu1 %v2763_v52 }
 0x457   :  { %1351 = vmatprep.subr.mxu0 %v2766_v60  ;;  %1422 = vmatprep.subr.mxu1 %v2769_v4 }
 0x458   :  { %1352 = vmatpush1.msra.mxu0 %v2772_v3  ;;  %1423 = vmatpush1.msra.mxu1 %v2775_v11 }
 0x459   :  { %1353 = vmatprep.subr.mxu0 %v2778_v1  ;;  %1424 = vmatprep.subr.mxu1 %v2781_v27 }
 0x45a   :  { %1354 = vmatpush1.msra.mxu0 %v3364_v15  ;;  %1425 = vmatpush1.msra.mxu1 %v3365_v16 }
 0x45b   :  { %1355 = vmatprep.subr.mxu0 %v2790_v31  ;;  %1426 = vmatprep.subr.mxu1 %v2793_v47 }
 0x45c   :  { %1356 = vmatpush1.msra.mxu0 %v2796_v0  ;;  %1427 = vmatpush1.msra.mxu1 %v2799_v54 }
 0x45d   :  { %1357 = vmatprep.subr.mxu0 %v2802_v28  ;;  %1428 = vmatprep.subr.mxu1 %v2805_v30 }
 0x45e   :  { %1358 = vmatpush1.msra.mxu0 %v2882_v17  ;;  %1429 = vmatpush1.msra.mxu1 %v2885_v18 }
 0x45f   :  { %1359 = vmatprep.subr.mxu0 %v2888_v19  ;;  %1430 = vmatprep.subr.mxu1 %v2891_v21 }
 0x460   :  { %1360 = vmatpush1.msra.mxu0 %v2894_v22  ;;  %1431 = vmatpush1.msra.mxu1 %v2897_v24 }
 0x461   :  { %1361 = vmatprep.subr.mxu0 %v2900_v2  ;;  %1432 = vmatprep.subr.mxu1 %v2903_v32 }
 0x462   :  { %1362 = vmatpush1.msra.mxu0 %v2906_v33  ;;  %1433 = vmatpush1.msra.mxu1 %v2909_v34 }
 0x463   :  { %1363 = vmatprep.subr.mxu0 %v2912_v35  ;;  %1434 = vmatprep.subr.mxu1 %v2915_v36 }
 0x464   :  { %1364 = vmatpush1.msra.mxu0 %v2918_v37  ;;  %1435 = vmatpush1.msra.mxu1 %v2921_v39 }
 0x465   :  { %1365 = vmatprep.subr.mxu0 %v2924_v40  ;;  %1436 = vmatprep.subr.mxu1 %v2927_v41 }
 0x466   :  { %1366 = vmatpush1.msra.mxu0 %v2930_v42  ;;  %1437 = vmatpush1.msra.mxu1 %v2933_v43 }
 0x467   :  { %1367 = vmatprep.subr.mxu0 %v2936_v44  ;;  %1438 = vmatprep.subr.mxu1 %v2939_v45 }
 0x468   :  { %1368 = vmatpush1.msra.mxu0 %v2942_v46  ;;  %1439 = vmatpush1.msra.mxu1 %v2945_v48 }
 0x469   :  { %1369 = vmatprep.subr.mxu0 %v2948_v49  ;;  %1440 = vmatprep.subr.mxu1 %v2951_v50  ;;  %v3386_v50 = vld [vmem:[#allocation46_spill] sm:$0xff] }
 0x46a   :  { %1370 = vmatpush1.msra.mxu0 %v2954_v51  ;;  %1441 = vmatpush1.msra.mxu1 %v2957_v20  ;;  %v3385_v51 = vld [vmem:[#allocation48_spill] sm:$0xff] }
 0x46b   :  { %1371 = vmatprep.subr.mxu0 %v2960_v62  ;;  %1442 = vmatprep.subr.mxu1 %v2963_v29 }
 0x46c   :  { %1372 = vmatpush1.msra.mxu0 %v2966_v5  ;;  %1443 = vmatpush1.msra.mxu1 %v2969_v6  ;;  %v3384_v5 = vld [vmem:[#allocation47_spill] sm:$0xff] }
 0x46d   :  { %1373 = vmatprep.subr.mxu0 %v2972_v7  ;;  %1444 = vmatprep.subr.mxu1 %v2975_v8  ;;  %v2990_v7 = vld [vmem:[#allocation7] sm:$0xff]  ;;  %v2994_v8 = vld [vmem:[#allocation7 + $0x10] sm:$0xff] }
 0x46e   :  { %1374 = vmatpush1.msra.mxu0 %v2978_v9  ;;  %1445 = vmatpush1.msra.mxu1 %v2981_v12  ;;  %3381 = vst [vmem:[#allocation26_spill] sm:$0xff] %v2990_v7  ;;  %3382 = vst [vmem:[#allocation27_spill] sm:$0xff] %v2994_v8  ;;  %v3383_v12 = vld [vmem:[#allocation45_spill] sm:$0xff] }
 0x46f   :  { %1375 = vmatprep.subr.mxu0 %v2984_v13  ;;  %1446 = vmatprep.subr.mxu1 %v2987_v14 }
 0x470   :  { %1376 = vmatpush1.msra.mxu0 %v2990_v7  ;;  %1409 = vmatprep.mubr.f32.mxu0 %v3350_v23 }
 0x471   :  { %1447 = vmatpush1.msra.mxu1 %v2994_v8  ;;  %1480 = vmatprep.mubr.f32.mxu1 %v3350_v23 }
 0x472   :  { %1519 = vmatprep.subr.mxu0 %v2722_v25  ;;  %1590 = vmatprep.subr.mxu1 %v2725_v26 }
 0x511   :  { %v1237_v13 = vpop.f32.mrf.mxu0  ;;  %v1308_v7 = vpop.f32.mrf.mxu1 }
 0x512   :  { %v1313_v9 = vadd.f32 %v1237_v13, %v3383_v12  ;;  %v1315_v23 = vadd.f32 %v1308_v7, %v3386_v50  ;;  %v3392_v7 = vld [vmem:[#allocation16_spill] sm:$0xff] }
 0x513   :  { %v1239_v14 = vpop.f32.mrf.mxu0  ;;  %v1310_v20 = vpop.f32.mrf.mxu1 }
 0x514   :  { %v1892_v6 = vmul.f32 -1.442695, %v1313_v9  ;;  %v1314_v29 = vadd.f32 %v1239_v14, %v3384_v5  ;;  %v1316_v8 = vadd.f32 %v1310_v20, %v3385_v51  ;;  %v3391_v20 = vld [vmem:[#allocation34_spill] sm:$0xff] }
 0x516   :  { %1973 = vpow2.f32 %v1892_v6  ;;  %v1893_v62 = vmul.f32 -1.442695, %v1314_v29  ;;  %v1894_v49 = vmul.f32 -1.442695, %v1316_v8  ;;  %v3393_v8 = vld [vmem:[#allocation17_spill] sm:$0xff] }
 0x518   :  { %1975 = vpow2.f32 %v1893_v62 }
 0x519   :  { %1977 = vtanh.f32 %v1315_v23 }
 0x51a   :  { %1979 = vpow2.f32 %v1894_v49  ;;  %v3390_v49 = vld [vmem:[#allocation36_spill] sm:$0xff] }
 0x523   :  { %v1974_v25 = vpop.eup %1973 }
 0x524   :  { %v1320_v48 = vadd.f32 1.0, %v1974_v25 }
 0x525   :  { %v1976_v26 = vpop.eup %1975 }
 0x526   :  { %1981 = vrcp.f32 %v1320_v48  ;;  %v1326_v12 = vadd.f32 1.0, %v1976_v26  ;;  %v1978_v9 = vpop.eup %1977  ;;  %v3387_v26 = vld [vmem:[#allocation12_spill] sm:$0xff]  ;;  %v3389_v48 = vld [vmem:[#allocation35_spill] sm:$0xff] }
 0x527   :  { %v1980_v5 = vpop.eup %1979 }
 0x528   :  { %1983 = vrcp.f32 %v1326_v12  ;;  %v1333_v62 = vadd.f32 1.0, %v1980_v5  ;;  %v3394_v12 = vld [vmem:[#allocation18_spill] sm:$0xff]  ;;  %v3396_v5 = vld [vmem:[#allocation20_spill] sm:$0xff] }
 0x52a   :  { %1985 = vrcp.f32 %v1333_v62  ;;  %v3400_v62 = vld [vmem:[#allocation24_spill] sm:$0xff] }
 0x533   :  { %v1982_v6 = vpop.eup %1981 }
 0x534   :  { %v1337_v13 = vmul.f32 %v1982_v6, %v1978_v9  ;;  %v3395_v9 = vld [vmem:[#allocation19_spill] sm:$0xff]  ;;  %v3397_v6 = vld [vmem:[#allocation21_spill] sm:$0xff] }
 0x535   :  { %v1984_v29 = vpop.eup %1983 }
 0x536   :  { %v1336_v14 = vmul.f32 %v1984_v29, %v2855_v10  ;;  %v3388_v10 = vld [vmem:[#allocation33_spill] sm:$0xff]  ;;  %v3399_v29 = vld [vmem:[#allocation23_spill] sm:$0xff] }
 0x537   :  { %v1986_v25 = vpop.eup %1985 }
 0x538   :  { %v3005_v51 = vadd.f32 %v1337_v13, %v1336_v14  ;;  %v3398_v13 = vld [vmem:[#allocation22_spill] sm:$0xff]  ;;  %v3401_v14 = vld [vmem:[#allocation25_spill] sm:$0xff] }
 0x53a   :  { %1987 = vtanh.f32 %v3005_v51 }
 0x547   :  { %v1988_v23 = vpop.eup %1987 }
 0x548   :  { %v1340_v50 = vmul.f32 %v1988_v23, %v1986_v25  ;;  %v3402_v25 = vld [vmem:[#allocation26_spill] sm:$0xff]  ;;  %v3403_v23 = vmov 0.0  }
 0x54a   :  { %1410 = vmatmul.mubr.f32.vlgmr.msra.gmra.mxu0 %v1340_v50  ;;  %1481 = vmatmul.mubr.f32.vlgmr.msra.gmra.mxu1 %v1340_v50  ;;  %v3404_v50 = vld [vmem:[#allocation27_spill] sm:$0xff] }
 0x54b   :  { %1520 = vmatpush1.msra.mxu0 %v2736_v38  ;;  %1591 = vmatpush1.msra.mxu1 %v2739_v59 }
 0x54c   :  { %1521 = vmatprep.subr.mxu0 %v2742_v58  ;;  %1592 = vmatprep.subr.mxu1 %v2745_v63 }
 0x54d   :  { %1522 = vmatpush1.msra.mxu0 %v2748_v53  ;;  %1593 = vmatpush1.msra.mxu1 %v2751_v56 }
 0x54e   :  { %1523 = vmatprep.subr.mxu0 %v2754_v57  ;;  %1594 = vmatprep.subr.mxu1 %v2757_v61 }
 0x54f   :  { %1524 = vmatpush1.msra.mxu0 %v2760_v55  ;;  %1595 = vmatpush1.msra.mxu1 %v2763_v52 }
 0x550   :  { %1525 = vmatprep.subr.mxu0 %v2766_v60  ;;  %1596 = vmatprep.subr.mxu1 %v2769_v4 }
 0x551   :  { %1526 = vmatpush1.msra.mxu0 %v2772_v3  ;;  %1597 = vmatpush1.msra.mxu1 %v2775_v11 }
 0x552   :  { %1527 = vmatprep.subr.mxu0 %v2778_v1  ;;  %1598 = vmatprep.subr.mxu1 %v2781_v27 }
 0x553   :  { %1528 = vmatpush1.msra.mxu0 %v3364_v15  ;;  %1599 = vmatpush1.msra.mxu1 %v3365_v16 }
 0x554   :  { %1529 = vmatprep.subr.mxu0 %v2790_v31  ;;  %1600 = vmatprep.subr.mxu1 %v2793_v47 }
 0x555   :  { %1530 = vmatpush1.msra.mxu0 %v2796_v0  ;;  %1601 = vmatpush1.msra.mxu1 %v2799_v54 }
 0x556   :  { %1531 = vmatprep.subr.mxu0 %v2802_v28  ;;  %1602 = vmatprep.subr.mxu1 %v2805_v30 }
 0x557   :  { %1532 = vmatpush1.msra.mxu0 %v2882_v17  ;;  %1603 = vmatpush1.msra.mxu1 %v2885_v18 }
 0x558   :  { %1533 = vmatprep.subr.mxu0 %v2888_v19  ;;  %1604 = vmatprep.subr.mxu1 %v2891_v21 }
 0x559   :  { %1534 = vmatpush1.msra.mxu0 %v2894_v22  ;;  %1605 = vmatpush1.msra.mxu1 %v2897_v24 }
 0x55a   :  { %1535 = vmatprep.subr.mxu0 %v2900_v2  ;;  %1606 = vmatprep.subr.mxu1 %v2903_v32 }
 0x55b   :  { %1536 = vmatpush1.msra.mxu0 %v2906_v33  ;;  %1607 = vmatpush1.msra.mxu1 %v2909_v34 }
 0x55c   :  { %1537 = vmatprep.subr.mxu0 %v2912_v35  ;;  %1608 = vmatprep.subr.mxu1 %v2915_v36 }
 0x55d   :  { %1538 = vmatpush1.msra.mxu0 %v2918_v37  ;;  %1609 = vmatpush1.msra.mxu1 %v2921_v39 }
 0x55e   :  { %1539 = vmatprep.subr.mxu0 %v2924_v40  ;;  %1610 = vmatprep.subr.mxu1 %v2927_v41 }
 0x55f   :  { %1540 = vmatpush1.msra.mxu0 %v2930_v42  ;;  %1611 = vmatpush1.msra.mxu1 %v2933_v43 }
 0x560   :  { %1541 = vmatprep.subr.mxu0 %v2936_v44  ;;  %1612 = vmatprep.subr.mxu1 %v2939_v45 }
 0x561   :  { %1542 = vmatpush1.msra.mxu0 %v2942_v46  ;;  %1613 = vmatpush1.msra.mxu1 %v3387_v26 }
 0x562   :  { %1543 = vmatprep.subr.mxu0 %v3388_v10  ;;  %1614 = vmatprep.subr.mxu1 %v3389_v48  ;;  %v3410_v48 = vld [vmem:[#allocation50_spill] sm:$0xff] }
 0x563   :  { %1544 = vmatpush1.msra.mxu0 %v3390_v49  ;;  %1615 = vmatpush1.msra.mxu1 %v3391_v20  ;;  %v3409_v49 = vld [vmem:[#allocation52_spill] sm:$0xff] }
 0x564   :  { %1545 = vmatprep.subr.mxu0 %v3392_v7  ;;  %1616 = vmatprep.subr.mxu1 %v3393_v8 }
 0x565   :  { %1546 = vmatpush1.msra.mxu0 %v3394_v12  ;;  %1617 = vmatpush1.msra.mxu1 %v3395_v9  ;;  %v3405_v9 = vld [vmem:[#allocation13_spill] sm:$0xff] }
 0x566   :  { %1547 = vmatprep.subr.mxu0 %v3396_v5  ;;  %1618 = vmatprep.subr.mxu1 %v3397_v6  ;;  %v3406_v5 = vld [vmem:[#allocation14_spill] sm:$0xff] }
 0x567   :  { %1548 = vmatpush1.msra.mxu0 %v3398_v13  ;;  %1619 = vmatpush1.msra.mxu1 %v3399_v29  ;;  %v3407_v13 = vld [vmem:[#allocation49_spill] sm:$0xff] }
 0x568   :  { %1549 = vmatprep.subr.mxu0 %v3400_v62  ;;  %1620 = vmatprep.subr.mxu1 %v3401_v14  ;;  %v3408_v62 = vld [vmem:[#allocation51_spill] sm:$0xff] }
 0x569   :  { %1550 = vmatpush1.msra.mxu0 %v3402_v25  ;;  %1583 = vmatprep.mubr.f32.mxu0 %v3403_v23 }
 0x56a   :  { %1621 = vmatpush1.msra.mxu1 %v3404_v50  ;;  %1654 = vmatprep.mubr.f32.mxu1 %v3403_v23 }
 0x56b   :  { %1693 = vmatprep.subr.mxu0 %v3405_v9  ;;  %1764 = vmatprep.subr.mxu1 %v3406_v5 }
 0x60a   :  { %v1411_v6 = vpop.f32.mrf.mxu0  ;;  %v1482_v14 = vpop.f32.mrf.mxu1 }
 0x60b   :  { %v1487_v12 = vadd.f32 %v1411_v6, %v3407_v13  ;;  %v1489_v23 = vadd.f32 %v1482_v14, %v3410_v48 }
 0x60c   :  { %v1413_v29 = vpop.f32.mrf.mxu0  ;;  %v1484_v20 = vpop.f32.mrf.mxu1 }
 0x60d   :  { %v1895_v8 = vmul.f32 -1.442695, %v1487_v12  ;;  %v1488_v7 = vadd.f32 %v1413_v29, %v3408_v62  ;;  %v1490_v50 = vadd.f32 %v1484_v20, %v3409_v49 }
 0x60f   :  { %1989 = vpow2.f32 %v1895_v8  ;;  %v1896_v25 = vmul.f32 -1.442695, %v1488_v7  ;;  %v1897_v10 = vmul.f32 -1.442695, %v1490_v50  ;;  %v3433_v50 = vld [vmem:[#allocation57_spill] sm:$0xff] }
 0x611   :  { %1991 = vpow2.f32 %v1896_v25 }
 0x612   :  { %1993 = vtanh.f32 %v1489_v23 }
 0x613   :  { %1995 = vpow2.f32 %v1897_v10 }
 0x61c   :  { %v1990_v9 = vpop.eup %1989 }
 0x61d   :  { %v1494_v26 = vadd.f32 1.0, %v1990_v9 }
 0x61e   :  { %v1992_v5 = vpop.eup %1991 }
 0x61f   :  { %1997 = vrcp.f32 %v1494_v26  ;;  %v1500_v6 = vadd.f32 1.0, %v1992_v5  ;;  %v1994_v12 = vpop.eup %1993 }
 0x620   :  { %v1996_v13 = vpop.eup %1995 }
 0x621   :  { %1999 = vrcp.f32 %v1500_v6  ;;  %v1507_v62 = vadd.f32 1.0, %v1996_v13 }
 0x623   :  { %2001 = vrcp.f32 %v1507_v62  ;;  %v3435_v62 = vld [vmem:[#allocation60_spill] sm:$0xff] }
 0x62c   :  { %v1998_v8 = vpop.eup %1997 }
 0x62d   :  { %v1511_v29 = vmul.f32 %v1998_v8, %v1994_v12  ;;  %v3434_v12 = vld [vmem:[#allocation59_spill] sm:$0xff] }
 0x62e   :  { %v2000_v7 = vpop.eup %1999 }
 0x62f   :  { %v1510_v25 = vmul.f32 %v2000_v7, %v3005_v51 }
 0x630   :  { %v2002_v48 = vpop.eup %2001 }
 0x631   :  { %v3079_v49 = vadd.f32 %v1511_v29, %v1510_v25 }
 0x633   :  { %2003 = vtanh.f32 %v3079_v49 }
 0x640   :  { %v2004_v20 = vpop.eup %2003 }
 0x641   :  { %v1514_v14 = vmul.f32 %v2004_v20, %v2002_v48 }
 0x643   :  { %1584 = vmatmul.mubr.f32.vlgmr.msra.gmra.mxu0 %v1514_v14  ;;  %1655 = vmatmul.mubr.f32.vlgmr.msra.gmra.mxu1 %v1514_v14 }
 0x644   :  { %1694 = vmatpush1.msra.mxu0 %v2736_v38  ;;  %1765 = vmatpush1.msra.mxu1 %v2739_v59  ;;  %v3411_v38 = vld [vmem:[#allocation12_spill] sm:$0xff]  ;;  %v3412_v59 = vld [vmem:[#allocation33_spill] sm:$0xff] }
 0x645   :  { %1695 = vmatprep.subr.mxu0 %v2742_v58  ;;  %1766 = vmatprep.subr.mxu1 %v2745_v63  ;;  %v3413_v58 = vld [vmem:[#allocation35_spill] sm:$0xff]  ;;  %v3414_v63 = vld [vmem:[#allocation36_spill] sm:$0xff] }
 0x646   :  { %1696 = vmatpush1.msra.mxu0 %v2748_v53  ;;  %1767 = vmatpush1.msra.mxu1 %v2751_v56  ;;  %v3415_v53 = vld [vmem:[#allocation34_spill] sm:$0xff]  ;;  %v3416_v56 = vld [vmem:[#allocation16_spill] sm:$0xff] }
 0x647   :  { %1697 = vmatprep.subr.mxu0 %v2754_v57  ;;  %1768 = vmatprep.subr.mxu1 %v2757_v61  ;;  %v3417_v57 = vld [vmem:[#allocation17_spill] sm:$0xff]  ;;  %v3418_v61 = vld [vmem:[#allocation18_spill] sm:$0xff] }
 0x648   :  { %1698 = vmatpush1.msra.mxu0 %v2760_v55  ;;  %1769 = vmatpush1.msra.mxu1 %v2763_v52  ;;  %v3419_v55 = vld [vmem:[#allocation19_spill] sm:$0xff]  ;;  %v3420_v52 = vld [vmem:[#allocation20_spill] sm:$0xff] }
 0x649   :  { %1699 = vmatprep.subr.mxu0 %v2766_v60  ;;  %1770 = vmatprep.subr.mxu1 %v2769_v4  ;;  %v3421_v60 = vld [vmem:[#allocation21_spill] sm:$0xff]  ;;  %v3422_v4 = vld [vmem:[#allocation22_spill] sm:$0xff] }
 0x64a   :  { %1700 = vmatpush1.msra.mxu0 %v2772_v3  ;;  %1771 = vmatpush1.msra.mxu1 %v2775_v11  ;;  %v3423_v3 = vld [vmem:[#allocation23_spill] sm:$0xff]  ;;  %v3424_v11 = vld [vmem:[#allocation24_spill] sm:$0xff] }
 0x64b   :  { %1701 = vmatprep.subr.mxu0 %v2778_v1  ;;  %1772 = vmatprep.subr.mxu1 %v2781_v27  ;;  %v3425_v1 = vld [vmem:[#allocation25_spill] sm:$0xff]  ;;  %v3426_v27 = vld [vmem:[#allocation26_spill] sm:$0xff] }
 0x64c   :  { %1702 = vmatpush1.msra.mxu0 %v3364_v15  ;;  %1773 = vmatpush1.msra.mxu1 %v3365_v16  ;;  %v3430_v16 = vld [vmem:[#allocation55_spill] sm:$0xff] }
 0x64d   :  { %1703 = vmatprep.subr.mxu0 %v2790_v31  ;;  %1774 = vmatprep.subr.mxu1 %v2793_v47  ;;  %v3429_v47 = vld [vmem:[#allocation53_spill] sm:$0xff] }
 0x64e   :  { %1704 = vmatpush1.msra.mxu0 %v2796_v0  ;;  %1775 = vmatpush1.msra.mxu1 %v2799_v54 }
 0x64f   :  { %1705 = vmatprep.subr.mxu0 %v2802_v28  ;;  %1776 = vmatprep.subr.mxu1 %v2805_v30  ;;  %v3427_v28 = vmov 0.0   ;;  %v3428_v30 = vld [vmem:[#allocation27_spill] sm:$0xff] }
 0x650   :  { %1706 = vmatpush1.msra.mxu0 %v2882_v17  ;;  %1777 = vmatpush1.msra.mxu1 %v2885_v18 }
 0x651   :  { %1707 = vmatprep.subr.mxu0 %v2888_v19  ;;  %1778 = vmatprep.subr.mxu1 %v2891_v21 }
 0x652   :  { %1708 = vmatpush1.msra.mxu0 %v2894_v22  ;;  %1779 = vmatpush1.msra.mxu1 %v2897_v24  ;;  %v3431_v22 = vld [vmem:[#allocation56_spill] sm:$0xff] }
 0x653   :  { %1709 = vmatprep.subr.mxu0 %v2900_v2  ;;  %1780 = vmatprep.subr.mxu1 %v2903_v32  ;;  %v3432_v2 = vld [vmem:[#allocation54_spill] sm:$0xff] }
 0x654   :  { %1710 = vmatpush1.msra.mxu0 %v2906_v33  ;;  %1781 = vmatpush1.msra.mxu1 %v2909_v34 }
 0x655   :  { %1711 = vmatprep.subr.mxu0 %v2912_v35  ;;  %1782 = vmatprep.subr.mxu1 %v2915_v36 }
 0x656   :  { %1712 = vmatpush1.msra.mxu0 %v2918_v37  ;;  %1783 = vmatpush1.msra.mxu1 %v2921_v39 }
 0x657   :  { %1713 = vmatprep.subr.mxu0 %v2924_v40  ;;  %1784 = vmatprep.subr.mxu1 %v2927_v41 }
 0x658   :  { %1714 = vmatpush1.msra.mxu0 %v2930_v42  ;;  %1785 = vmatpush1.msra.mxu1 %v2933_v43 }
 0x659   :  { %1715 = vmatprep.subr.mxu0 %v2936_v44  ;;  %1786 = vmatprep.subr.mxu1 %v2939_v45 }
 0x65a   :  { %1716 = vmatpush1.msra.mxu0 %v2942_v46  ;;  %1787 = vmatpush1.msra.mxu1 %v3411_v38 }
 0x65b   :  { %1717 = vmatprep.subr.mxu0 %v3412_v59  ;;  %1788 = vmatprep.subr.mxu1 %v3413_v58 }
 0x65c   :  { %1718 = vmatpush1.msra.mxu0 %v3414_v63  ;;  %1789 = vmatpush1.msra.mxu1 %v3415_v53 }
 0x65d   :  { %1719 = vmatprep.subr.mxu0 %v3416_v56  ;;  %1790 = vmatprep.subr.mxu1 %v3417_v57 }
 0x65e   :  { %1720 = vmatpush1.msra.mxu0 %v3418_v61  ;;  %1791 = vmatpush1.msra.mxu1 %v3419_v55 }
 0x65f   :  { %1721 = vmatprep.subr.mxu0 %v3420_v52  ;;  %1792 = vmatprep.subr.mxu1 %v3421_v60 }
 0x660   :  { %1722 = vmatpush1.msra.mxu0 %v3422_v4  ;;  %1793 = vmatpush1.msra.mxu1 %v3423_v3 }
 0x661   :  { %1723 = vmatprep.subr.mxu0 %v3424_v11  ;;  %1794 = vmatprep.subr.mxu1 %v3425_v1 }
 0x662   :  { %1724 = vmatpush1.msra.mxu0 %v3426_v27  ;;  %1757 = vmatprep.mubr.f32.mxu0 %v3427_v28 }
 0x663   :  { %1795 = vmatpush1.msra.mxu1 %v3428_v30  ;;  %1828 = vmatprep.mubr.f32.mxu1 %v3427_v28 }
 0x703   :  { %v1585_v31 = vpop.f32.mrf.mxu0  ;;  %v1656_v18 = vpop.f32.mrf.mxu1 }
 0x704   :  { %v1661_v0 = vadd.f32 %v1585_v31, %v3429_v47  ;;  %v1663_v32 = vadd.f32 %v1656_v18, %v3432_v2 }
 0x705   :  { %v1587_v54 = vpop.f32.mrf.mxu0  ;;  %v1658_v21 = vpop.f32.mrf.mxu1 }
 0x706   :  { %v1898_v15 = vmul.f32 -1.442695, %v1661_v0  ;;  %v1662_v17 = vadd.f32 %v1587_v54, %v3430_v16  ;;  %v1664_v24 = vadd.f32 %v1658_v21, %v3431_v22 }
 0x708   :  { %2005 = vpow2.f32 %v1898_v15  ;;  %v1899_v19 = vmul.f32 -1.442695, %v1662_v17  ;;  %v1900_v33 = vmul.f32 -1.442695, %v1664_v24 }
 0x70a   :  { %2007 = vpow2.f32 %v1899_v19 }
 0x70b   :  { %2009 = vtanh.f32 %v1663_v32 }
 0x70c   :  { %2011 = vpow2.f32 %v1900_v33 }
 0x715   :  { %v2006_v34 = vpop.eup %2005 }
 0x716   :  { %v1668_v35 = vadd.f32 1.0, %v2006_v34 }
 0x717   :  { %v2008_v36 = vpop.eup %2007 }
 0x718   :  { %2013 = vrcp.f32 %v1668_v35  ;;  %v1674_v37 = vadd.f32 1.0, %v2008_v36  ;;  %v2010_v39 = vpop.eup %2009 }
 0x719   :  { %v2012_v40 = vpop.eup %2011 }
 0x71a   :  { %2015 = vrcp.f32 %v1674_v37  ;;  %v1681_v44 = vadd.f32 1.0, %v2012_v40 }
 0x71c   :  { %2017 = vrcp.f32 %v1681_v44 }
 0x725   :  { %v2014_v41 = vpop.eup %2013 }
 0x726   :  { %v1685_v42 = vmul.f32 %v2014_v41, %v2010_v39 }
 0x727   :  { %v2016_v43 = vpop.eup %2015 }
 0x728   :  { %v1684_v45 = vmul.f32 %v2016_v43, %v3079_v49  ;;  %v3436_v49 = vld [vmem:[#allocation58_spill] sm:$0xff] }
 0x729   :  { %v2018_v51 = vpop.eup %2017 }
 0x72a   :  { %v1686_v46 = vadd.f32 %v1685_v42, %v1684_v45 }
 0x72c   :  { %2019 = vtanh.f32 %v1686_v46 }
 0x739   :  { %v2020_v26 = vpop.eup %2019 }
 0x73a   :  { %v1688_v10 = vmul.f32 %v2020_v26, %v2018_v51 }
 0x73c   :  { %1758 = vmatmul.mubr.f32.vlgmr.msra.gmra.mxu0 %v1688_v10  ;;  %1829 = vmatmul.mubr.f32.vlgmr.msra.gmra.mxu1 %v1688_v10 }
 0x7fc   :  { %v1759_v23 = vpop.f32.mrf.mxu0  ;;  %v1830_v8 = vpop.f32.mrf.mxu1 }
 0x7fd   :  { %v1835_v9 = vadd.f32 %v1759_v23, %v3433_v50  ;;  %v1837_v48 = vadd.f32 %v1830_v8, %v3436_v49 }
 0x7fe   :  { %v1761_v5 = vpop.f32.mrf.mxu0  ;;  %v1832_v7 = vpop.f32.mrf.mxu1 }
 0x7ff   :  { %v1901_v6 = vmul.f32 -1.442695, %v1835_v9  ;;  %v1836_v13 = vadd.f32 %v1761_v5, %v3434_v12  ;;  %v1838_v25 = vadd.f32 %v1832_v7, %v3435_v62 }
 0x801   :  { %2021 = vpow2.f32 %v1901_v6  ;;  %v1902_v29 = vmul.f32 -1.442695, %v1836_v13  ;;  %v1903_v20 = vmul.f32 -1.442695, %v1838_v25 }
 0x803   :  { %2023 = vpow2.f32 %v1902_v29 }
 0x804   :  { %2025 = vtanh.f32 %v1837_v48 }
 0x805   :  { %2027 = vpow2.f32 %v1903_v20 }
 0x80e   :  { %v2022_v14 = vpop.eup %2021 }
 0x80f   :  { %v1842_v38 = vadd.f32 1.0, %v2022_v14 }
 0x810   :  { %v2024_v59 = vpop.eup %2023 }
 0x811   :  { %2029 = vrcp.f32 %v1842_v38  ;;  %v1848_v58 = vadd.f32 1.0, %v2024_v59  ;;  %v2026_v63 = vpop.eup %2025 }
 0x812   :  { %v2028_v53 = vpop.eup %2027 }
 0x813   :  { %2031 = vrcp.f32 %v1848_v58  ;;  %v1855_v55 = vadd.f32 1.0, %v2028_v53 }
 0x815   :  { %2033 = vrcp.f32 %v1855_v55 }
 0x81e   :  { %v2030_v56 = vpop.eup %2029 }
 0x81f   :  { %v1859_v57 = vmul.f32 %v2030_v56, %v2026_v63 }
 0x820   :  { %v2032_v61 = vpop.eup %2031 }
 0x821   :  { %v1858_v52 = vmul.f32 %v2032_v61, %v1686_v46 }
 0x822   :  { %v2034_v4 = vpop.eup %2033 }
 0x823   :  { %v1860_v60 = vadd.f32 %v1859_v57, %v1858_v52 }
 0x825   :  { %2035 = vtanh.f32 %v1860_v60  ;;  %1869 = vst [vmem:[%s3166_s5] sm:$0xff] %v1860_v60 }
 0x832   :  { %v2036_v3 = vpop.eup %2035 }
 0x833   :  { %v1862_v11 = vmul.f32 %v2036_v3, %v2034_v4 }
 0x835   :  { %1868 = vst [vmem:[%s3165_s4] sm:$0xff] %v1862_v11 }
 0x836   :  { %1878 = vsyncpa [#allocation6], 1 }
 0x837   :  { %1879 = vsyncpa [#allocation8], 1 }

</bundles_post_ra>
